<compile_context>
chip_gen: v7x
topology: tpu7x:2x2x1
jax: 0.10.0
libtpu: 0.0.40
codegen_flags: <defaults>
</compile_context>

<pallas_src>
import functools

import jax
import jax.numpy as jnp
from jax.experimental import pallas as pl
from jax.experimental.pallas import tpu as pltpu


def _round_up(x: int, m: int) -> int:
    return ((x + m - 1) // m) * m


def _conv3x3s2_ln_kernel(xm_ref, xh_ref, w_ref, b_ref, g_ref, be_ref, out_ref,
                         acc_ref, *, s: int, wo_p: int, lanes: int, cout: int,
                         apply_gelu: bool, eps: float):
    """One (image, row-band) grid step.

    xm_ref : [1, s, Cf, L]   bf16  folded input band; lane = (q*2+p)*Cin + ch
                                   (q/p = row/col parity of the zero-padded input)
    xh_ref : [1, 1, Cf, L]   bf16  one-row halo = folded row (t+1)*s of same array
    w_ref  : [4, L, cout]    bf16  folded conv weights for views A/B/C/D
    b/g/be : [1, cout]       f32   conv bias, LN gamma, LN beta
    out_ref: [1, s, wo_p, cout]
    acc_ref: [s*wo_p, cout]  f32   scratch accumulator
    """
    L = lanes
    tm = s * wo_p

    def mm(lhs, wi):
        return jnp.dot(lhs, w_ref[wi], preferred_element_type=jnp.float32)

    # View A: folded cell (r, c)     -> taps (ky,kx) in {0,1}x{0,1}
    # View B: folded cell (r, c+1)   -> taps kx=2, ky in {0,1}
    # View C: folded cell (r+1, c)   -> taps ky=2, kx in {0,1}
    # View D: folded cell (r+1, c+1) -> tap  (ky,kx) = (2,2)
    a = xm_ref[0, :, 0:wo_p, :].reshape(tm, L)
    b = xm_ref[0, :, 1:wo_p + 1, :].reshape(tm, L)      # col-shift view, built once
    acc_ref[...] = mm(a, 0) + mm(b, 1)

    # C/D contributions for output rows 0..s-2 come from the band itself ...
    if s > 1:
        cm = xm_ref[0, 1:s, 0:wo_p, :].reshape((s - 1) * wo_p, L)
        dm = xm_ref[0, 1:s, 1:wo_p + 1, :].reshape((s - 1) * wo_p, L)
        acc_ref[0:(s - 1) * wo_p, :] += mm(cm, 2) + mm(dm, 3)
    # ... and for the last output row from the 1-row halo (no band copy needed).
    ch = xh_ref[0, :, 0:wo_p, :].reshape(wo_p, L)
    dh = xh_ref[0, :, 1:wo_p + 1, :].reshape(wo_p, L)
    acc_ref[(s - 1) * wo_p:tm, :] += mm(ch, 2) + mm(dh, 3)

    # ---- f32 epilogue: bias + LayerNorm2d over the (unpadded) channels (+GELU) --
    h = acc_ref[...] + b_ref[...]
    mu = jnp.mean(h, axis=-1, keepdims=True)
    diff = h - mu
    var = jnp.mean(diff * diff, axis=-1, keepdims=True)
    hn = diff * jax.lax.rsqrt(var + eps) * g_ref[...] + be_ref[...]
    if apply_gelu:
        # exact erf GELU (matches torch.nn.GELU())
        hn = 0.5 * hn * (1.0 + jax.lax.erf(hn * 0.7071067811865476))
    out_ref[0] = hn.reshape(s, wo_p, cout).astype(out_ref.dtype)


def conv3x3s2_ln(x_nhwc, weight, bias, gamma, beta, *, apply_gelu,
                 eps=1e-5, out_dtype=None, target_rows=1536):
    """conv3x3 stride-2 pad-1 + bias + LayerNorm2d (+GELU) on an NHWC input."""
    N, H, W, cin = x_nhwc.shape
    cout = weight.shape[0]
    ho, wo = (H + 1) // 2, (W + 1) // 2            # PyTorch output size
    wo_p = _round_up(wo, 16)                        # bf16 sublane tile (review #5)
    L = 4 * cin                                     # folded lanes: (q, p, channel)
    out_dtype = x_nhwc.dtype if out_dtype is None else out_dtype
    out_isz = 4 if out_dtype == jnp.float32 else 2

    # Output rows per grid step: big tiles, bounded by a conservative VMEM budget
    # that also fits v7x's 64 MiB (reviews #6/#7).
    s = max(1, min(ho, max(1, target_rows // wo_p)))

    def _step_bytes(rows):
        band = 2 * (rows + 1) * (wo_p + 1) * L * 2      # double-buffered band+halo
        outb = 2 * rows * wo_p * cout * out_isz          # double-buffered out tile
        accb = rows * wo_p * cout * 4                    # f32 scratch accumulator
        wgt = 2 * 4 * L * cout * 2                       # weights (both buffers)
        return band + outb + accb + wgt

    while s > 1 and _step_bytes(s) > (12 << 20):
        s = max(1, s // 2)

    n_t = pl.cdiv(ho, s)
    ho_p = n_t * s
    tm = s * wo_p
    Rf, Cf = ho_p + 1, wo_p + 1

    # --- glue: one fused pad + bf16 cast + 2x2 space-to-depth fold (no halo
    #     stack, no per-channel padding to 128) ---------------------------------
    xpad = jnp.pad(x_nhwc.astype(jnp.bfloat16),
                   ((0, 0), (1, 2 * Rf - 1 - H), (1, 2 * Cf - 1 - W), (0, 0)))
    F = xpad.reshape(N, Rf, 2, Cf, 2, cin).transpose(0, 1, 3, 2, 4, 5)
    F = F.reshape(N, Rf, Cf, L)                     # F[n,r,c,(q*2+p)*cin+ch]

    # --- conv weights [Cout, Cin, 3, 3] -> 4 folded [L, Cout] matrices ----------
    w = weight.astype(jnp.float32)
    wa = jnp.transpose(w[:, :, 0:2, 0:2], (2, 3, 1, 0)).reshape(L, cout)
    wb_q = jnp.transpose(w[:, :, 0:2, 2], (2, 1, 0))                 # [q, cin, cout]
    wb = jnp.stack([wb_q, jnp.zeros_like(wb_q)], axis=1).reshape(L, cout)
    wc_p = jnp.transpose(w[:, :, 2, 0:2], (2, 1, 0))                 # [p, cin, cout]
    wc = jnp.stack([wc_p, jnp.zeros_like(wc_p)], axis=0).reshape(L, cout)
    wd = jnp.zeros((2, 2, cin, cout), jnp.float32).at[0, 0].set(
        jnp.transpose(w[:, :, 2, 2], (1, 0))).reshape(L, cout)
    w4 = jnp.stack([wa, wb, wc, wd], axis=0).astype(jnp.bfloat16)    # [4, L, cout]

    b2 = bias.astype(jnp.float32).reshape(1, cout)
    g2 = gamma.astype(jnp.float32).reshape(1, cout)
    be2 = beta.astype(jnp.float32).reshape(1, cout)

    kern = functools.partial(_conv3x3s2_ln_kernel, s=s, wo_p=wo_p, lanes=L,
                             cout=cout, apply_gelu=apply_gelu, eps=eps)

    out = pl.pallas_call(
        kern,
        out_shape=jax.ShapeDtypeStruct((N, ho_p, wo_p, cout), out_dtype),
        grid_spec=pltpu.PrefetchScalarGridSpec(
            num_scalar_prefetch=0,
            grid=(N, n_t),
            in_specs=[
                # non-overlapping s-row band of the folded input
                pl.BlockSpec((1, s, Cf, L), lambda n, t: (n, t, 0, 0)),
                # 1-row halo from the SAME array (block row size 1 => element index)
                pl.BlockSpec((1, 1, Cf, L), lambda n, t: (n, (t + 1) * s, 0, 0)),
                pl.BlockSpec((4, L, cout), lambda n, t: (0, 0, 0)),   # weights
                pl.BlockSpec((1, cout), lambda n, t: (0, 0)),         # bias
                pl.BlockSpec((1, cout), lambda n, t: (0, 0)),         # LN gamma
                pl.BlockSpec((1, cout), lambda n, t: (0, 0)),         # LN beta
            ],
            out_specs=pl.BlockSpec((1, s, wo_p, cout), lambda n, t: (n, t, 0, 0)),
            scratch_shapes=[pltpu.VMEM((tm, cout), jnp.float32)],
        ),
        compiler_params=pltpu.CompilerParams(
            dimension_semantics=("parallel", "parallel"),
            vmem_limit_bytes=48 * 1024 * 1024),
    )(F, F, w4, b2, g2, be2)

    # Spatial crop only; under jit it fuses with the next stage's pad/fold copy.
    return out[:, :ho, :wo, :]


def init_downsample_v2_params(key, in_chs, out_chs, ratio=0.5):
    """Deterministic synthetic parameters matching DownsampleV2(patch_size=4)."""
    mid_chs = int(out_chs * ratio)
    ks = jax.random.split(key, 8)

    def conv_w(k, co, ci):
        fan_in = ci * 9
        return jax.random.normal(k, (co, ci, 3, 3), jnp.float32) / jnp.sqrt(fan_in)

    return {
        # conv1: in_chs -> mid_chs, conv + LayerNorm2d + GELU
        "w1": conv_w(ks[0], mid_chs, in_chs),
        "b1": 0.01 * jax.random.normal(ks[1], (mid_chs,), jnp.float32),
        "g1": 1.0 + 0.01 * jax.random.normal(ks[2], (mid_chs,), jnp.float32),
        "be1": 0.01 * jax.random.normal(ks[3], (mid_chs,), jnp.float32),
        # conv2: mid_chs -> out_chs, conv + LayerNorm2d (act_cfg=None)
        "w2": conv_w(ks[4], out_chs, mid_chs),
        "b2": 0.01 * jax.random.normal(ks[5], (out_chs,), jnp.float32),
        "g2": 1.0 + 0.01 * jax.random.normal(ks[6], (out_chs,), jnp.float32),
        "be2": 0.01 * jax.random.normal(ks[7], (out_chs,), jnp.float32),
    }


def downsample_v2_forward(x_nchw, params):
    """Forward: NCHW in -> NCHW out, spatial downsample by 4 (patch_size=4)."""
    x = jnp.transpose(x_nchw, (0, 2, 3, 1))        # NCHW -> NHWC
    # conv1: conv -> LayerNorm2d -> GELU ; intermediate kept dense bf16 NHWC
    x = conv3x3s2_ln(x, params["w1"], params["b1"], params["g1"], params["be1"],
                     apply_gelu=True, out_dtype=jnp.bfloat16)
    # conv2: conv -> LayerNorm2d (no activation) ; final result f32
    x = conv3x3s2_ln(x, params["w2"], params["b2"], params["g2"], params["be2"],
                     apply_gelu=False, out_dtype=jnp.float32)
    return jnp.transpose(x, (0, 3, 1, 2))          # NHWC -> NCHW


def _ref_forward(x_nchw, params, eps=1e-5):
    """Pure-JAX f32 reference of the PyTorch module (for a sanity check)."""
    def stage(x, w, b, g, be, act):
        y = jax.lax.conv_general_dilated(
            x, w, window_strides=(2, 2), padding=((1, 1), (1, 1)),
            dimension_numbers=("NCHW", "OIHW", "NCHW"))
        y = y + b.reshape(1, -1, 1, 1)
        mu = jnp.mean(y, axis=1, keepdims=True)
        var = jnp.mean((y - mu) ** 2, axis=1, keepdims=True)
        y = (y - mu) * jax.lax.rsqrt(var + eps)
        y = y * g.reshape(1, -1, 1, 1) + be.reshape(1, -1, 1, 1)
        if act:
            y = 0.5 * y * (1.0 + jax.lax.erf(y * 0.7071067811865476))
        return y

    y = stage(x_nchw, params["w1"], params["b1"], params["g1"], params["be1"], True)
    y = stage(y, params["w2"], params["b2"], params["g2"], params["be2"], False)
    return y


if __name__ == "__main__":
    key = jax.random.PRNGKey(0)
    k_x, k_p = jax.random.split(key)

    # small shapes: batch=2, in_chs=4, out_chs=8, spatial=16 (patch_size=4, ratio=0.5)
    N, in_chs, H, W = 2, 4, 16, 16
    out_chs = 8

    x = jax.random.normal(k_x, (N, in_chs, H, W), jnp.float32)
    params = init_downsample_v2_params(k_p, in_chs, out_chs, ratio=0.5)

    fwd = jax.jit(downsample_v2_forward)
    out = jax.block_until_ready(fwd(x, params))

    assert out.shape == (N, out_chs, H // 4, W // 4), out.shape
    assert bool(jnp.all(jnp.isfinite(out)))

    # loose tolerance: kernel uses bf16 MXU inputs and a bf16 intermediate
    ref = jax.jit(_ref_forward)(x, params)
    max_err = float(jnp.max(jnp.abs(out - ref)))
    assert max_err < 0.25, f"mismatch vs f32 reference: max abs err = {max_err}"

    print("KERNEL_OK")
</pallas_src>

<mosaic_0001>
module attributes {stable_mosaic.version = 11 : i64} {
  func.func @_conv3x3s2_ln_kernel(%arg0: i32, %arg1: i32, %arg2: memref<1x8x17x16xbf16, #tpu.memory_space<vmem>>, %arg3: memref<1x1x17x16xbf16, #tpu.memory_space<vmem>>, %arg4: memref<4x16x4xbf16, #tpu.memory_space<vmem>>, %arg5: memref<1x4xf32, #tpu.memory_space<vmem>>, %arg6: memref<1x4xf32, #tpu.memory_space<vmem>>, %arg7: memref<1x4xf32, #tpu.memory_space<vmem>>, %arg8: memref<1x8x16x4xbf16, #tpu.memory_space<vmem>>, %arg9: memref<128x4xf32, #tpu.memory_space<vmem>>) attributes {dimension_semantics = [#tpu.dimension_semantics<parallel>, #tpu.dimension_semantics<parallel>], iteration_bounds = array<i64: 2, 1>, scalar_prefetch = 0 : i64, scratch_operands = 1 : i64, tpu.core_type = #tpu.core_type<tc>, window_params = [{transform_indices = @transform_0, window_bounds = array<i64: 1, 8, 17, 16>}, {transform_indices = @transform_1, window_bounds = array<i64: 1, 1, 17, 16>}, {pipeline_mode = #tpu.pipeline_mode<synchronous>, transform_indices = @transform_2, window_bounds = array<i64: 4, 16, 4>}, {pipeline_mode = #tpu.pipeline_mode<synchronous>, transform_indices = @transform_3, window_bounds = array<i64: 1, 4>}, {pipeline_mode = #tpu.pipeline_mode<synchronous>, transform_indices = @transform_4, window_bounds = array<i64: 1, 4>}, {pipeline_mode = #tpu.pipeline_mode<synchronous>, transform_indices = @transform_5, window_bounds = array<i64: 1, 4>}, {transform_indices = @transform_6, window_bounds = array<i64: 1, 8, 16, 4>}]} {
    %c0 = arith.constant 0 : index
    %c0_0 = arith.constant 0 : index
    %c0_1 = arith.constant 0 : index
    %c0_2 = arith.constant 0 : index
    %0 = vector.load %arg2[%c0, %c0_0, %c0_1, %c0_2] : memref<1x8x17x16xbf16, #tpu.memory_space<vmem>>, vector<1x8x16x16xbf16>
    %1 = vector.shape_cast %0 : vector<1x8x16x16xbf16> to vector<8x16x16xbf16>
    %2 = vector.shape_cast %1 : vector<8x16x16xbf16> to vector<128x16xbf16>
    %c0_3 = arith.constant 0 : index
    %c0_4 = arith.constant 0 : index
    %c1 = arith.constant 1 : index
    %c0_5 = arith.constant 0 : index
    %3 = vector.load %arg2[%c0_3, %c0_4, %c1, %c0_5] : memref<1x8x17x16xbf16, #tpu.memory_space<vmem>>, vector<1x8x16x16xbf16>
    %4 = vector.shape_cast %3 : vector<1x8x16x16xbf16> to vector<8x16x16xbf16>
    %5 = vector.shape_cast %4 : vector<8x16x16xbf16> to vector<128x16xbf16>
    %c0_6 = arith.constant 0 : index
    %c0_7 = arith.constant 0 : index
    %c0_8 = arith.constant 0 : index
    %6 = vector.load %arg4[%c0_6, %c0_7, %c0_8] : memref<4x16x4xbf16, #tpu.memory_space<vmem>>, vector<1x16x4xbf16>
    %7 = vector.shape_cast %6 : vector<1x16x4xbf16> to vector<16x4xbf16>
    %cst = arith.constant dense<0.000000e+00> : vector<128x4xf32>
    %8 = tpu.matmul %2, %7, %cst {dimension_numbers = #tpu.dot_dimension_numbers<[1], [0], [0], [1], [0, 0, 1, 1], [], []>} : vector<128x16xbf16>, vector<16x4xbf16>, vector<128x4xf32> -> vector<128x4xf32>
    %c1_9 = arith.constant 1 : index
    %c0_10 = arith.constant 0 : index
    %c0_11 = arith.constant 0 : index
    %9 = vector.load %arg4[%c1_9, %c0_10, %c0_11] : memref<4x16x4xbf16, #tpu.memory_space<vmem>>, vector<1x16x4xbf16>
    %10 = vector.shape_cast %9 : vector<1x16x4xbf16> to vector<16x4xbf16>
    %cst_12 = arith.constant dense<0.000000e+00> : vector<128x4xf32>
    %11 = tpu.matmul %5, %10, %cst_12 {dimension_numbers = #tpu.dot_dimension_numbers<[1], [0], [0], [1], [0, 0, 1, 1], [], []>} : vector<128x16xbf16>, vector<16x4xbf16>, vector<128x4xf32> -> vector<128x4xf32>
    %12 = arith.addf %8, %11 : vector<128x4xf32>
    %c0_13 = arith.constant 0 : index
    %c0_14 = arith.constant 0 : index
    %13 = vector.load %arg9[%c0_13, %c0_14] : memref<128x4xf32, #tpu.memory_space<vmem>>, vector<128x4xf32>
    tpu.vector_store %arg9[%c0_13, %c0_14], %12 {strides = array<i32>} : memref<128x4xf32, #tpu.memory_space<vmem>>, vector<128x4xf32>,
    %c0_15 = arith.constant 0 : index
    %c1_16 = arith.constant 1 : index
    %c0_17 = arith.constant 0 : index
    %c0_18 = arith.constant 0 : index
    %14 = vector.load %arg2[%c0_15, %c1_16, %c0_17, %c0_18] : memref<1x8x17x16xbf16, #tpu.memory_space<vmem>>, vector<1x7x16x16xbf16>
    %15 = vector.shape_cast %14 : vector<1x7x16x16xbf16> to vector<7x16x16xbf16>
    %16 = vector.shape_cast %15 : vector<7x16x16xbf16> to vector<112x16xbf16>
    %c0_19 = arith.constant 0 : index
    %c1_20 = arith.constant 1 : index
    %c1_21 = arith.constant 1 : index
    %c0_22 = arith.constant 0 : index
    %17 = vector.load %arg2[%c0_19, %c1_20, %c1_21, %c0_22] : memref<1x8x17x16xbf16, #tpu.memory_space<vmem>>, vector<1x7x16x16xbf16>
    %18 = vector.shape_cast %17 : vector<1x7x16x16xbf16> to vector<7x16x16xbf16>
    %19 = vector.shape_cast %18 : vector<7x16x16xbf16> to vector<112x16xbf16>
    %c0_23 = arith.constant 0 : index
    %c0_24 = arith.constant 0 : index
    %20 = vector.load %arg9[%c0_23, %c0_24] : memref<128x4xf32, #tpu.memory_space<vmem>>, vector<112x4xf32>
    %c2 = arith.constant 2 : index
    %c0_25 = arith.constant 0 : index
    %c0_26 = arith.constant 0 : index
    %21 = vector.load %arg4[%c2, %c0_25, %c0_26] : memref<4x16x4xbf16, #tpu.memory_space<vmem>>, vector<1x16x4xbf16>
    %22 = vector.shape_cast %21 : vector<1x16x4xbf16> to vector<16x4xbf16>
    %cst_27 = arith.constant dense<0.000000e+00> : vector<112x4xf32>
    %23 = tpu.matmul %16, %22, %cst_27 {dimension_numbers = #tpu.dot_dimension_numbers<[1], [0], [0], [1], [0, 0, 1, 1], [], []>} : vector<112x16xbf16>, vector<16x4xbf16>, vector<112x4xf32> -> vector<112x4xf32>
    %c3 = arith.constant 3 : index
    %c0_28 = arith.constant 0 : index
    %c0_29 = arith.constant 0 : index
    %24 = vector.load %arg4[%c3, %c0_28, %c0_29] : memref<4x16x4xbf16, #tpu.memory_space<vmem>>, vector<1x16x4xbf16>
    %25 = vector.shape_cast %24 : vector<1x16x4xbf16> to vector<16x4xbf16>
    %cst_30 = arith.constant dense<0.000000e+00> : vector<112x4xf32>
    %26 = tpu.matmul %19, %25, %cst_30 {dimension_numbers = #tpu.dot_dimension_numbers<[1], [0], [0], [1], [0, 0, 1, 1], [], []>} : vector<112x16xbf16>, vector<16x4xbf16>, vector<112x4xf32> -> vector<112x4xf32>
    %27 = arith.addf %23, %26 : vector<112x4xf32>
    %28 = arith.addf %20, %27 : vector<112x4xf32>
    %c0_31 = arith.constant 0 : index
    %c0_32 = arith.constant 0 : index
    %29 = vector.load %arg9[%c0_31, %c0_32] : memref<128x4xf32, #tpu.memory_space<vmem>>, vector<112x4xf32>
    tpu.vector_store %arg9[%c0_31, %c0_32], %28 {strides = array<i32>} : memref<128x4xf32, #tpu.memory_space<vmem>>, vector<112x4xf32>,
    %c0_33 = arith.constant 0 : index
    %c0_34 = arith.constant 0 : index
    %c0_35 = arith.constant 0 : index
    %c0_36 = arith.constant 0 : index
    %30 = vector.load %arg3[%c0_33, %c0_34, %c0_35, %c0_36] : memref<1x1x17x16xbf16, #tpu.memory_space<vmem>>, vector<1x1x16x16xbf16>
    %31 = vector.shape_cast %30 : vector<1x1x16x16xbf16> to vector<1x16x16xbf16>
    %32 = vector.shape_cast %31 : vector<1x16x16xbf16> to vector<16x16xbf16>
    %c0_37 = arith.constant 0 : index
    %c0_38 = arith.constant 0 : index
    %c1_39 = arith.constant 1 : index
    %c0_40 = arith.constant 0 : index
    %33 = vector.load %arg3[%c0_37, %c0_38, %c1_39, %c0_40] : memref<1x1x17x16xbf16, #tpu.memory_space<vmem>>, vector<1x1x16x16xbf16>
    %34 = vector.shape_cast %33 : vector<1x1x16x16xbf16> to vector<1x16x16xbf16>
    %35 = vector.shape_cast %34 : vector<1x16x16xbf16> to vector<16x16xbf16>
    %c112 = arith.constant 112 : index
    %c0_41 = arith.constant 0 : index
    %36 = vector.load %arg9[%c112, %c0_41] : memref<128x4xf32, #tpu.memory_space<vmem>>, vector<16x4xf32>
    %c2_42 = arith.constant 2 : index
    %c0_43 = arith.constant 0 : index
    %c0_44 = arith.constant 0 : index
    %37 = vector.load %arg4[%c2_42, %c0_43, %c0_44] : memref<4x16x4xbf16, #tpu.memory_space<vmem>>, vector<1x16x4xbf16>
    %38 = vector.shape_cast %37 : vector<1x16x4xbf16> to vector<16x4xbf16>
    %cst_45 = arith.constant dense<0.000000e+00> : vector<16x4xf32>
    %39 = tpu.matmul %32, %38, %cst_45 {dimension_numbers = #tpu.dot_dimension_numbers<[1], [0], [0], [1], [0, 0, 1, 1], [], []>} : vector<16x16xbf16>, vector<16x4xbf16>, vector<16x4xf32> -> vector<16x4xf32>
    %c3_46 = arith.constant 3 : index
    %c0_47 = arith.constant 0 : index
    %c0_48 = arith.constant 0 : index
    %40 = vector.load %arg4[%c3_46, %c0_47, %c0_48] : memref<4x16x4xbf16, #tpu.memory_space<vmem>>, vector<1x16x4xbf16>
    %41 = vector.shape_cast %40 : vector<1x16x4xbf16> to vector<16x4xbf16>
    %cst_49 = arith.constant dense<0.000000e+00> : vector<16x4xf32>
    %42 = tpu.matmul %35, %41, %cst_49 {dimension_numbers = #tpu.dot_dimension_numbers<[1], [0], [0], [1], [0, 0, 1, 1], [], []>} : vector<16x16xbf16>, vector<16x4xbf16>, vector<16x4xf32> -> vector<16x4xf32>
    %43 = arith.addf %39, %42 : vector<16x4xf32>
    %44 = arith.addf %36, %43 : vector<16x4xf32>
    %c112_50 = arith.constant 112 : index
    %c0_51 = arith.constant 0 : index
    %45 = vector.load %arg9[%c112_50, %c0_51] : memref<128x4xf32, #tpu.memory_space<vmem>>, vector<16x4xf32>
    tpu.vector_store %arg9[%c112_50, %c0_51], %44 {strides = array<i32>} : memref<128x4xf32, #tpu.memory_space<vmem>>, vector<16x4xf32>,
    %c0_52 = arith.constant 0 : index
    %c0_53 = arith.constant 0 : index
    %46 = vector.load %arg9[%c0_52, %c0_53] : memref<128x4xf32, #tpu.memory_space<vmem>>, vector<128x4xf32>
    %c0_54 = arith.constant 0 : index
    %c0_55 = arith.constant 0 : index
    %47 = vector.load %arg5[%c0_54, %c0_55] : memref<1x4xf32, #tpu.memory_space<vmem>>, vector<1x4xf32>
    %48 = vector.broadcast %47 : vector<1x4xf32> to vector<128x4xf32>
    %49 = arith.addf %46, %48 : vector<128x4xf32>
    %cst_56 = arith.constant dense<0.000000e+00> : vector<128xf32>
    %50 = vector.multi_reduction <add>, %49, %cst_56 [1] : vector<128x4xf32> to vector<128xf32>
    %51 = vector.shape_cast %50 : vector<128xf32> to vector<128x1xf32>
    %cst_57 = arith.constant 4.000000e+00 : f32
    %52 = vector.broadcast %cst_57 : f32 to vector<128x1xf32>
    %53 = arith.divf %51, %52 : vector<128x1xf32>
    %54 = vector.broadcast %53 : vector<128x1xf32> to vector<128x4xf32>
    %55 = arith.subf %49, %54 : vector<128x4xf32>
    %56 = arith.mulf %55, %55 : vector<128x4xf32>
    %cst_58 = arith.constant dense<0.000000e+00> : vector<128xf32>
    %57 = vector.multi_reduction <add>, %56, %cst_58 [1] : vector<128x4xf32> to vector<128xf32>
    %58 = vector.shape_cast %57 : vector<128xf32> to vector<128x1xf32>
    %cst_59 = arith.constant 4.000000e+00 : f32
    %59 = vector.broadcast %cst_59 : f32 to vector<128x1xf32>
    %60 = arith.divf %58, %59 : vector<128x1xf32>
    %cst_60 = arith.constant 9.99999974E-6 : f32
    %61 = vector.broadcast %cst_60 : f32 to vector<128x1xf32>
    %62 = arith.addf %60, %61 : vector<128x1xf32>
    %63 = math.rsqrt %62 : vector<128x1xf32>
    %64 = vector.broadcast %63 : vector<128x1xf32> to vector<128x4xf32>
    %65 = arith.mulf %55, %64 : vector<128x4xf32>
    %c0_61 = arith.constant 0 : index
    %c0_62 = arith.constant 0 : index
    %66 = vector.load %arg6[%c0_61, %c0_62] : memref<1x4xf32, #tpu.memory_space<vmem>>, vector<1x4xf32>
    %67 = vector.broadcast %66 : vector<1x4xf32> to vector<128x4xf32>
    %68 = arith.mulf %65, %67 : vector<128x4xf32>
    %c0_63 = arith.constant 0 : index
    %c0_64 = arith.constant 0 : index
    %69 = vector.load %arg7[%c0_63, %c0_64] : memref<1x4xf32, #tpu.memory_space<vmem>>, vector<1x4xf32>
    %70 = vector.broadcast %69 : vector<1x4xf32> to vector<128x4xf32>
    %71 = arith.addf %68, %70 : vector<128x4xf32>
    %cst_65 = arith.constant 5.000000e-01 : f32
    %72 = vector.broadcast %cst_65 : f32 to vector<128x4xf32>
    %73 = arith.mulf %72, %71 : vector<128x4xf32>
    %cst_66 = arith.constant 0.707106769 : f32
    %74 = vector.broadcast %cst_66 : f32 to vector<128x4xf32>
    %75 = arith.mulf %71, %74 : vector<128x4xf32>
    %76 = math.erf %75 : vector<128x4xf32>
    %cst_67 = arith.constant 1.000000e+00 : f32
    %77 = vector.broadcast %cst_67 : f32 to vector<128x4xf32>
    %78 = arith.addf %77, %76 : vector<128x4xf32>
    %79 = arith.mulf %73, %78 : vector<128x4xf32>
    %80 = vector.shape_cast %79 : vector<128x4xf32> to vector<8x16x4xf32>
    %81 = arith.truncf %80 : vector<8x16x4xf32> to vector<8x16x4xbf16>
    %c0_68 = arith.constant 0 : index
    %c0_69 = arith.constant 0 : index
    %c0_70 = arith.constant 0 : index
    %c0_71 = arith.constant 0 : index
    %82 = vector.load %arg8[%c0_68, %c0_69, %c0_70, %c0_71] : memref<1x8x16x4xbf16, #tpu.memory_space<vmem>>, vector<1x8x16x4xbf16>
    %83 = vector.shape_cast %82 : vector<1x8x16x4xbf16> to vector<8x16x4xbf16>
    %84 = vector.shape_cast %81 : vector<8x16x4xbf16> to vector<1x8x16x4xbf16>
    tpu.vector_store %arg8[%c0_68, %c0_69, %c0_70, %c0_71], %84 {strides = array<i32>} : memref<1x8x16x4xbf16, #tpu.memory_space<vmem>>, vector<1x8x16x4xbf16>,
    return
  }
  func.func @transform_0(%arg0: i32, %arg1: i32) -> (i32, i32, i32, i32) {
    %c0_i32 = arith.constant 0 : i32
    %c0_i32_0 = arith.constant 0 : i32
    %c0_i32_1 = arith.constant 0 : i32
    return %arg0, %arg1, %c0_i32, %c0_i32_0 : i32, i32, i32, i32
  }
  func.func @transform_1(%arg0: i32, %arg1: i32) -> (i32, i32, i32, i32) {
    %c1_i32 = arith.constant 1 : i32
    %0 = arith.addi %arg1, %c1_i32 : i32
    %c8_i32 = arith.constant 8 : i32
    %1 = arith.muli %0, %c8_i32 : i32
    %c0_i32 = arith.constant 0 : i32
    %c0_i32_0 = arith.constant 0 : i32
    %c0_i32_1 = arith.constant 0 : i32
    return %arg0, %1, %c0_i32, %c0_i32_0 : i32, i32, i32, i32
  }
  func.func @transform_2(%arg0: i32, %arg1: i32) -> (i32, i32, i32) {
    %c0_i32 = arith.constant 0 : i32
    %c0_i32_0 = arith.constant 0 : i32
    %c0_i32_1 = arith.constant 0 : i32
    %c0_i32_2 = arith.constant 0 : i32
    return %c0_i32, %c0_i32_0, %c0_i32_1 : i32, i32, i32
  }
  func.func @transform_3(%arg0: i32, %arg1: i32) -> (i32, i32) {
    %c0_i32 = arith.constant 0 : i32
    %c0_i32_0 = arith.constant 0 : i32
    %c0_i32_1 = arith.constant 0 : i32
    return %c0_i32, %c0_i32_0 : i32, i32
  }
  func.func @transform_4(%arg0: i32, %arg1: i32) -> (i32, i32) {
    %c0_i32 = arith.constant 0 : i32
    %c0_i32_0 = arith.constant 0 : i32
    %c0_i32_1 = arith.constant 0 : i32
    return %c0_i32, %c0_i32_0 : i32, i32
  }
  func.func @transform_5(%arg0: i32, %arg1: i32) -> (i32, i32) {
    %c0_i32 = arith.constant 0 : i32
    %c0_i32_0 = arith.constant 0 : i32
    %c0_i32_1 = arith.constant 0 : i32
    return %c0_i32, %c0_i32_0 : i32, i32
  }
  func.func @transform_6(%arg0: i32, %arg1: i32) -> (i32, i32, i32, i32) {
    %c0_i32 = arith.constant 0 : i32
    %c0_i32_0 = arith.constant 0 : i32
    %c0_i32_1 = arith.constant 0 : i32
    return %arg0, %arg1, %c0_i32, %c0_i32_0 : i32, i32, i32, i32
  }
}

module attributes {stable_mosaic.version = 11 : i64} {
  func.func @_conv3x3s2_ln_kernel(%arg0: i32, %arg1: i32, %arg2: memref<1x4x17x16xbf16, #tpu.memory_space<vmem>>, %arg3: memref<1x1x17x16xbf16, #tpu.memory_space<vmem>>, %arg4: memref<4x16x8xbf16, #tpu.memory_space<vmem>>, %arg5: memref<1x8xf32, #tpu.memory_space<vmem>>, %arg6: memref<1x8xf32, #tpu.memory_space<vmem>>, %arg7: memref<1x8xf32, #tpu.memory_space<vmem>>, %arg8: memref<1x4x16x8xf32, #tpu.memory_space<vmem>>, %arg9: memref<64x8xf32, #tpu.memory_space<vmem>>) attributes {dimension_semantics = [#tpu.dimension_semantics<parallel>, #tpu.dimension_semantics<parallel>], iteration_bounds = array<i64: 2, 1>, scalar_prefetch = 0 : i64, scratch_operands = 1 : i64, tpu.core_type = #tpu.core_type<tc>, window_params = [{transform_indices = @transform_0, window_bounds = array<i64: 1, 4, 17, 16>}, {transform_indices = @transform_1, window_bounds = array<i64: 1, 1, 17, 16>}, {pipeline_mode = #tpu.pipeline_mode<synchronous>, transform_indices = @transform_2, window_bounds = array<i64: 4, 16, 8>}, {pipeline_mode = #tpu.pipeline_mode<synchronous>, transform_indices = @transform_3, window_bounds = array<i64: 1, 8>}, {pipeline_mode = #tpu.pipeline_mode<synchronous>, transform_indices = @transform_4, window_bounds = array<i64: 1, 8>}, {pipeline_mode = #tpu.pipeline_mode<synchronous>, transform_indices = @transform_5, window_bounds = array<i64: 1, 8>}, {transform_indices = @transform_6, window_bounds = array<i64: 1, 4, 16, 8>}]} {
    %c0 = arith.constant 0 : index
    %c0_0 = arith.constant 0 : index
    %c0_1 = arith.constant 0 : index
    %c0_2 = arith.constant 0 : index
    %0 = vector.load %arg2[%c0, %c0_0, %c0_1, %c0_2] : memref<1x4x17x16xbf16, #tpu.memory_space<vmem>>, vector<1x4x16x16xbf16>
    %1 = vector.shape_cast %0 : vector<1x4x16x16xbf16> to vector<4x16x16xbf16>
    %2 = vector.shape_cast %1 : vector<4x16x16xbf16> to vector<64x16xbf16>
    %c0_3 = arith.constant 0 : index
    %c0_4 = arith.constant 0 : index
    %c1 = arith.constant 1 : index
    %c0_5 = arith.constant 0 : index
    %3 = vector.load %arg2[%c0_3, %c0_4, %c1, %c0_5] : memref<1x4x17x16xbf16, #tpu.memory_space<vmem>>, vector<1x4x16x16xbf16>
    %4 = vector.shape_cast %3 : vector<1x4x16x16xbf16> to vector<4x16x16xbf16>
    %5 = vector.shape_cast %4 : vector<4x16x16xbf16> to vector<64x16xbf16>
    %c0_6 = arith.constant 0 : index
    %c0_7 = arith.constant 0 : index
    %c0_8 = arith.constant 0 : index
    %6 = vector.load %arg4[%c0_6, %c0_7, %c0_8] : memref<4x16x8xbf16, #tpu.memory_space<vmem>>, vector<1x16x8xbf16>
    %7 = vector.shape_cast %6 : vector<1x16x8xbf16> to vector<16x8xbf16>
    %cst = arith.constant dense<0.000000e+00> : vector<64x8xf32>
    %8 = tpu.matmul %2, %7, %cst {dimension_numbers = #tpu.dot_dimension_numbers<[1], [0], [0], [1], [0, 0, 1, 1], [], []>} : vector<64x16xbf16>, vector<16x8xbf16>, vector<64x8xf32> -> vector<64x8xf32>
    %c1_9 = arith.constant 1 : index
    %c0_10 = arith.constant 0 : index
    %c0_11 = arith.constant 0 : index
    %9 = vector.load %arg4[%c1_9, %c0_10, %c0_11] : memref<4x16x8xbf16, #tpu.memory_space<vmem>>, vector<1x16x8xbf16>
    %10 = vector.shape_cast %9 : vector<1x16x8xbf16> to vector<16x8xbf16>
    %cst_12 = arith.constant dense<0.000000e+00> : vector<64x8xf32>
    %11 = tpu.matmul %5, %10, %cst_12 {dimension_numbers = #tpu.dot_dimension_numbers<[1], [0], [0], [1], [0, 0, 1, 1], [], []>} : vector<64x16xbf16>, vector<16x8xbf16>, vector<64x8xf32> -> vector<64x8xf32>
    %12 = arith.addf %8, %11 : vector<64x8xf32>
    %c0_13 = arith.constant 0 : index
    %c0_14 = arith.constant 0 : index
    %13 = vector.load %arg9[%c0_13, %c0_14] : memref<64x8xf32, #tpu.memory_space<vmem>>, vector<64x8xf32>
    tpu.vector_store %arg9[%c0_13, %c0_14], %12 {strides = array<i32>} : memref<64x8xf32, #tpu.memory_space<vmem>>, vector<64x8xf32>,
    %c0_15 = arith.constant 0 : index
    %c1_16 = arith.constant 1 : index
    %c0_17 = arith.constant 0 : index
    %c0_18 = arith.constant 0 : index
    %14 = vector.load %arg2[%c0_15, %c1_16, %c0_17, %c0_18] : memref<1x4x17x16xbf16, #tpu.memory_space<vmem>>, vector<1x3x16x16xbf16>
    %15 = vector.shape_cast %14 : vector<1x3x16x16xbf16> to vector<3x16x16xbf16>
    %16 = vector.shape_cast %15 : vector<3x16x16xbf16> to vector<48x16xbf16>
    %c0_19 = arith.constant 0 : index
    %c1_20 = arith.constant 1 : index
    %c1_21 = arith.constant 1 : index
    %c0_22 = arith.constant 0 : index
    %17 = vector.load %arg2[%c0_19, %c1_20, %c1_21, %c0_22] : memref<1x4x17x16xbf16, #tpu.memory_space<vmem>>, vector<1x3x16x16xbf16>
    %18 = vector.shape_cast %17 : vector<1x3x16x16xbf16> to vector<3x16x16xbf16>
    %19 = vector.shape_cast %18 : vector<3x16x16xbf16> to vector<48x16xbf16>
    %c0_23 = arith.constant 0 : index
    %c0_24 = arith.constant 0 : index
    %20 = vector.load %arg9[%c0_23, %c0_24] : memref<64x8xf32, #tpu.memory_space<vmem>>, vector<48x8xf32>
    %c2 = arith.constant 2 : index
    %c0_25 = arith.constant 0 : index
    %c0_26 = arith.constant 0 : index
    %21 = vector.load %arg4[%c2, %c0_25, %c0_26] : memref<4x16x8xbf16, #tpu.memory_space<vmem>>, vector<1x16x8xbf16>
    %22 = vector.shape_cast %21 : vector<1x16x8xbf16> to vector<16x8xbf16>
    %cst_27 = arith.constant dense<0.000000e+00> : vector<48x8xf32>
    %23 = tpu.matmul %16, %22, %cst_27 {dimension_numbers = #tpu.dot_dimension_numbers<[1], [0], [0], [1], [0, 0, 1, 1], [], []>} : vector<48x16xbf16>, vector<16x8xbf16>, vector<48x8xf32> -> vector<48x8xf32>
    %c3 = arith.constant 3 : index
    %c0_28 = arith.constant 0 : index
    %c0_29 = arith.constant 0 : index
    %24 = vector.load %arg4[%c3, %c0_28, %c0_29] : memref<4x16x8xbf16, #tpu.memory_space<vmem>>, vector<1x16x8xbf16>
    %25 = vector.shape_cast %24 : vector<1x16x8xbf16> to vector<16x8xbf16>
    %cst_30 = arith.constant dense<0.000000e+00> : vector<48x8xf32>
    %26 = tpu.matmul %19, %25, %cst_30 {dimension_numbers = #tpu.dot_dimension_numbers<[1], [0], [0], [1], [0, 0, 1, 1], [], []>} : vector<48x16xbf16>, vector<16x8xbf16>, vector<48x8xf32> -> vector<48x8xf32>
    %27 = arith.addf %23, %26 : vector<48x8xf32>
    %28 = arith.addf %20, %27 : vector<48x8xf32>
    %c0_31 = arith.constant 0 : index
    %c0_32 = arith.constant 0 : index
    %29 = vector.load %arg9[%c0_31, %c0_32] : memref<64x8xf32, #tpu.memory_space<vmem>>, vector<48x8xf32>
    tpu.vector_store %arg9[%c0_31, %c0_32], %28 {strides = array<i32>} : memref<64x8xf32, #tpu.memory_space<vmem>>, vector<48x8xf32>,
    %c0_33 = arith.constant 0 : index
    %c0_34 = arith.constant 0 : index
    %c0_35 = arith.constant 0 : index
    %c0_36 = arith.constant 0 : index
    %30 = vector.load %arg3[%c0_33, %c0_34, %c0_35, %c0_36] : memref<1x1x17x16xbf16, #tpu.memory_space<vmem>>, vector<1x1x16x16xbf16>
    %31 = vector.shape_cast %30 : vector<1x1x16x16xbf16> to vector<1x16x16xbf16>
    %32 = vector.shape_cast %31 : vector<1x16x16xbf16> to vector<16x16xbf16>
    %c0_37 = arith.constant 0 : index
    %c0_38 = arith.constant 0 : index
    %c1_39 = arith.constant 1 : index
    %c0_40 = arith.constant 0 : index
    %33 = vector.load %arg3[%c0_37, %c0_38, %c1_39, %c0_40] : memref<1x1x17x16xbf16, #tpu.memory_space<vmem>>, vector<1x1x16x16xbf16>
    %34 = vector.shape_cast %33 : vector<1x1x16x16xbf16> to vector<1x16x16xbf16>
    %35 = vector.shape_cast %34 : vector<1x16x16xbf16> to vector<16x16xbf16>
    %c48 = arith.constant 48 : index
    %c0_41 = arith.constant 0 : index
    %36 = vector.load %arg9[%c48, %c0_41] : memref<64x8xf32, #tpu.memory_space<vmem>>, vector<16x8xf32>
    %c2_42 = arith.constant 2 : index
    %c0_43 = arith.constant 0 : index
    %c0_44 = arith.constant 0 : index
    %37 = vector.load %arg4[%c2_42, %c0_43, %c0_44] : memref<4x16x8xbf16, #tpu.memory_space<vmem>>, vector<1x16x8xbf16>
    %38 = vector.shape_cast %37 : vector<1x16x8xbf16> to vector<16x8xbf16>
    %cst_45 = arith.constant dense<0.000000e+00> : vector<16x8xf32>
    %39 = tpu.matmul %32, %38, %cst_45 {dimension_numbers = #tpu.dot_dimension_numbers<[1], [0], [0], [1], [0, 0, 1, 1], [], []>} : vector<16x16xbf16>, vector<16x8xbf16>, vector<16x8xf32> -> vector<16x8xf32>
    %c3_46 = arith.constant 3 : index
    %c0_47 = arith.constant 0 : index
    %c0_48 = arith.constant 0 : index
    %40 = vector.load %arg4[%c3_46, %c0_47, %c0_48] : memref<4x16x8xbf16, #tpu.memory_space<vmem>>, vector<1x16x8xbf16>
    %41 = vector.shape_cast %40 : vector<1x16x8xbf16> to vector<16x8xbf16>
    %cst_49 = arith.constant dense<0.000000e+00> : vector<16x8xf32>
    %42 = tpu.matmul %35, %41, %cst_49 {dimension_numbers = #tpu.dot_dimension_numbers<[1], [0], [0], [1], [0, 0, 1, 1], [], []>} : vector<16x16xbf16>, vector<16x8xbf16>, vector<16x8xf32> -> vector<16x8xf32>
    %43 = arith.addf %39, %42 : vector<16x8xf32>
    %44 = arith.addf %36, %43 : vector<16x8xf32>
    %c48_50 = arith.constant 48 : index
    %c0_51 = arith.constant 0 : index
    %45 = vector.load %arg9[%c48_50, %c0_51] : memref<64x8xf32, #tpu.memory_space<vmem>>, vector<16x8xf32>
    tpu.vector_store %arg9[%c48_50, %c0_51], %44 {strides = array<i32>} : memref<64x8xf32, #tpu.memory_space<vmem>>, vector<16x8xf32>,
    %c0_52 = arith.constant 0 : index
    %c0_53 = arith.constant 0 : index
    %46 = vector.load %arg9[%c0_52, %c0_53] : memref<64x8xf32, #tpu.memory_space<vmem>>, vector<64x8xf32>
    %c0_54 = arith.constant 0 : index
    %c0_55 = arith.constant 0 : index
    %47 = vector.load %arg5[%c0_54, %c0_55] : memref<1x8xf32, #tpu.memory_space<vmem>>, vector<1x8xf32>
    %48 = vector.broadcast %47 : vector<1x8xf32> to vector<64x8xf32>
    %49 = arith.addf %46, %48 : vector<64x8xf32>
    %cst_56 = arith.constant dense<0.000000e+00> : vector<64xf32>
    %50 = vector.multi_reduction <add>, %49, %cst_56 [1] : vector<64x8xf32> to vector<64xf32>
    %51 = vector.shape_cast %50 : vector<64xf32> to vector<64x1xf32>
    %cst_57 = arith.constant 8.000000e+00 : f32
    %52 = vector.broadcast %cst_57 : f32 to vector<64x1xf32>
    %53 = arith.divf %51, %52 : vector<64x1xf32>
    %54 = vector.broadcast %53 : vector<64x1xf32> to vector<64x8xf32>
    %55 = arith.subf %49, %54 : vector<64x8xf32>
    %56 = arith.mulf %55, %55 : vector<64x8xf32>
    %cst_58 = arith.constant dense<0.000000e+00> : vector<64xf32>
    %57 = vector.multi_reduction <add>, %56, %cst_58 [1] : vector<64x8xf32> to vector<64xf32>
    %58 = vector.shape_cast %57 : vector<64xf32> to vector<64x1xf32>
    %cst_59 = arith.constant 8.000000e+00 : f32
    %59 = vector.broadcast %cst_59 : f32 to vector<64x1xf32>
    %60 = arith.divf %58, %59 : vector<64x1xf32>
    %cst_60 = arith.constant 9.99999974E-6 : f32
    %61 = vector.broadcast %cst_60 : f32 to vector<64x1xf32>
    %62 = arith.addf %60, %61 : vector<64x1xf32>
    %63 = math.rsqrt %62 : vector<64x1xf32>
    %64 = vector.broadcast %63 : vector<64x1xf32> to vector<64x8xf32>
    %65 = arith.mulf %55, %64 : vector<64x8xf32>
    %c0_61 = arith.constant 0 : index
    %c0_62 = arith.constant 0 : index
    %66 = vector.load %arg6[%c0_61, %c0_62] : memref<1x8xf32, #tpu.memory_space<vmem>>, vector<1x8xf32>
    %67 = vector.broadcast %66 : vector<1x8xf32> to vector<64x8xf32>
    %68 = arith.mulf %65, %67 : vector<64x8xf32>
    %c0_63 = arith.constant 0 : index
    %c0_64 = arith.constant 0 : index
    %69 = vector.load %arg7[%c0_63, %c0_64] : memref<1x8xf32, #tpu.memory_space<vmem>>, vector<1x8xf32>
    %70 = vector.broadcast %69 : vector<1x8xf32> to vector<64x8xf32>
    %71 = arith.addf %68, %70 : vector<64x8xf32>
    %72 = vector.shape_cast %71 : vector<64x8xf32> to vector<4x16x8xf32>
    %c0_65 = arith.constant 0 : index
    %c0_66 = arith.constant 0 : index
    %c0_67 = arith.constant 0 : index
    %c0_68 = arith.constant 0 : index
    %73 = vector.load %arg8[%c0_65, %c0_66, %c0_67, %c0_68] : memref<1x4x16x8xf32, #tpu.memory_space<vmem>>, vector<1x4x16x8xf32>
    %74 = vector.shape_cast %73 : vector<1x4x16x8xf32> to vector<4x16x8xf32>
    %75 = vector.shape_cast %72 : vector<4x16x8xf32> to vector<1x4x16x8xf32>
    tpu.vector_store %arg8[%c0_65, %c0_66, %c0_67, %c0_68], %75 {strides = array<i32>} : memref<1x4x16x8xf32, #tpu.memory_space<vmem>>, vector<1x4x16x8xf32>,
    return
  }
  func.func @transform_0(%arg0: i32, %arg1: i32) -> (i32, i32, i32, i32) {
    %c0_i32 = arith.constant 0 : i32
    %c0_i32_0 = arith.constant 0 : i32
    %c0_i32_1 = arith.constant 0 : i32
    return %arg0, %arg1, %c0_i32, %c0_i32_0 : i32, i32, i32, i32
  }
  func.func @transform_1(%arg0: i32, %arg1: i32) -> (i32, i32, i32, i32) {
    %c1_i32 = arith.constant 1 : i32
    %0 = arith.addi %arg1, %c1_i32 : i32
    %c4_i32 = arith.constant 4 : i32
    %1 = arith.muli %0, %c4_i32 : i32
    %c0_i32 = arith.constant 0 : i32
    %c0_i32_0 = arith.constant 0 : i32
    %c0_i32_1 = arith.constant 0 : i32
    return %arg0, %1, %c0_i32, %c0_i32_0 : i32, i32, i32, i32
  }
  func.func @transform_2(%arg0: i32, %arg1: i32) -> (i32, i32, i32) {
    %c0_i32 = arith.constant 0 : i32
    %c0_i32_0 = arith.constant 0 : i32
    %c0_i32_1 = arith.constant 0 : i32
    %c0_i32_2 = arith.constant 0 : i32
    return %c0_i32, %c0_i32_0, %c0_i32_1 : i32, i32, i32
  }
  func.func @transform_3(%arg0: i32, %arg1: i32) -> (i32, i32) {
    %c0_i32 = arith.constant 0 : i32
    %c0_i32_0 = arith.constant 0 : i32
    %c0_i32_1 = arith.constant 0 : i32
    return %c0_i32, %c0_i32_0 : i32, i32
  }
  func.func @transform_4(%arg0: i32, %arg1: i32) -> (i32, i32) {
    %c0_i32 = arith.constant 0 : i32
    %c0_i32_0 = arith.constant 0 : i32
    %c0_i32_1 = arith.constant 0 : i32
    return %c0_i32, %c0_i32_0 : i32, i32
  }
  func.func @transform_5(%arg0: i32, %arg1: i32) -> (i32, i32) {
    %c0_i32 = arith.constant 0 : i32
    %c0_i32_0 = arith.constant 0 : i32
    %c0_i32_1 = arith.constant 0 : i32
    return %c0_i32, %c0_i32_0 : i32, i32
  }
  func.func @transform_6(%arg0: i32, %arg1: i32) -> (i32, i32, i32, i32) {
    %c0_i32 = arith.constant 0 : i32
    %c0_i32_0 = arith.constant 0 : i32
    %c0_i32_1 = arith.constant 0 : i32
    return %arg0, %arg1, %c0_i32, %c0_i32_0 : i32, i32, i32, i32
  }
}

</mosaic_0001>

<bundles_post_ra>
// kernel: downsample_v2_forward.2
= control target key start
LH: loop header
LB: loop body
LE: loop exit
PB: predicated region body
PF: predicated region fallthrough
CT: control target
= control target key end

     0   :  { %s2652_s21 = smov 0   ;;  %s2654_s22 = smov 0   ;;  %s3401_s0 = inlined_call_operand.vmem [shape: bf16[2,9,17,16], index: 0, kind: input, shape index: {}, may-alias: {0,1}]   ;;  %s3402_s1 = inlined_call_operand.vmem [shape: bf16[2,9,17,16], index: 1, kind: input, shape index: {}, may-alias: {0,1}]   ;;  %s3403_s2 = inlined_call_operand.vmem [shape: bf16[4,16,4], index: 2, kind: input, shape index: {}]   ;;  %s3404_s3 = inlined_call_operand.vmem [shape: f32[1,4], index: 3, kind: input, shape index: {}]   ;;  %s3405_s4 = inlined_call_operand.vmem [shape: f32[1,4], index: 4, kind: input, shape index: {}]   ;;  %s3406_s5 = inlined_call_operand.vmem [shape: f32[1,4], index: 5, kind: input, shape index: {}]   ;;  %s3407_s6 = inlined_call_operand.vmem [shape: bf16[2,8,16,4], index: 6, kind: output, shape index: {}]  }
   0x1   :  { %s2656_s23 = smov 0  }
   0x2 LB: > { %s28_s24 = sadd.s32 1, %s2609_s22  ;;  %p2165_p0 = scmp.ge.s32.totalorder %s2613_s23, 1  ;;  %s2613_s23 = sphi %s2656_s23, %s16_s23   ;;  %s2609_s22 = sphi %s2654_s22, %s3411_s22   ;;  %s2605_s21 = sphi %s2652_s21, %s3410_s21  }
   0x3   : > { %p30_p1 = scmp.ge.s32.totalorder %s28_s24, 2  ;;  %p268_p2 = scmp.lt.s32.totalorder %s2613_s23, 3 }
   0x5   : > { %s3413_s24 = smov (%p30_p1, %s28_s24), 0  ;;  %p269_p3 = pnand %p2165_p0, %p268_p2 }
   0x6   : > { %v2673_v0 = vld [vmem:[%s3403_s2 + $0x18] sm:$0xff] (!%p269_p3)   ;;  %v2615_v1 = vmov (!%p269_p3), 0.0   ;;  %v2505_v2 = vld [vmem:[%s3403_s2 + $0x8] sm:$0xff] (!%p269_p3)   ;;  %vm2616_vm0 = vmmov (!%p269_p3), 0   ;;  %p330_p4 = scmp.lt.s32.totalorder (!%p269_p3), %s2605_s21, 1  ;;  %v2688_v3 = vld [vmem:[%s3403_s2] sm:$0xff] (!%p269_p3)  }
   0x7   : > { %272 = sbr.rel (%p269_p3) target bundleno = 709 (0x2c5), region = 44  ;;  %2457 = vmatprep.subr.bf16.mxu1 (!%p269_p3), %v2615_v1  ;;  %2395 = vmatprep.mubr.msk.bf16.mxu1 (!%p269_p3), %vm2616_vm0, %v2615_v1  ;;  %vm394_vm1 = vsmask.f32 (!%p269_p3), 3328  ;;  %vm395_vm2 = vsmask.f32 (!%p269_p3), 7440  ;;  %vm624_vm3 = vcmask (!%p269_p3), 130048  }
   0x8   : > { %2458 = vmatpush3.bf16.msra.mxu1 (!%p269_p3), %v2673_v0  ;;  %2349 = vmatprep.subr.bf16.mxu0 (!%p269_p3), %v2505_v2  ;;  %vm2729_vm4 = vmor (!%p269_p3), %vm394_vm1, %vm395_vm2  ;;  %vm1473_vm5 = vsmask.f32 (!%p269_p3), 7424  ;;  %vm913_vm6 = vcmask (!%p269_p3), 31744   ;;  %vm2027_vm7 = vcmask (!%p269_p3), 27648  }
   0x9   : > { %2415 = vmatprep.subr.bf16.mxu1 (!%p269_p3), %v2615_v1  ;;  %2350 = vmatpush3.bf16.msra.mxu0 (!%p269_p3), %v2505_v2 }
   0xa   : > { %2367 = vmatprep.subr.bf16.mxu0 (!%p269_p3), %v2688_v3 }
   0xe   : > { %s3415_s21 = smov (!%p330_p4, %s2605_s21), 1 }
   0xf   : > { %s2475_s7 = smul.u32 108, %s3415_s21 }
  0x11   : > { %s2697_s10 = scalar_lea.vmem %s3401_s0, %s2475_s7  ;;  %s2293_s13 = sadd.s32 96, %s2475_s7 }
  0x12   : > { %v2700_v4 = vld [vmem:[%s2697_s10] sm:$0xf]  ;;  %v2703_v5 = vld [vmem:[%s2697_s10 + $0x4] sm:$0xf]  ;;  %v386_v6 = vld [vmem:[%s2697_s10 + $0x8] sm:$0x1]  ;;  %s2847_s16 = scalar_lea.vmem %s3402_s1, %s2293_s13 }
  0x13   : > { %v398_v7 = vshrl.u32 %v2700_v4, 16  ;;  %v401_v8 = vshll.u32 %v2700_v4, 16  ;;  %v407_v9 = vshll.u32 %v2703_v5, 16  ;;  %v411_v10 = vshrl.u32 %v2703_v5, 16  ;;  %v2711_v11 = vld [vmem:[%s2697_s10 + $0x24] sm:$0xf] }
  0x14   : > { %v417_v12 = vshll.u32 %v386_v6, 16  ;;  %v2714_v13 = vld [vmem:[%s2697_s10 + $0x28] sm:$0xf]  ;;  %v2222_v14 = vld [vmem:[%s2697_s10 + $0x2c] sm:$0x1]  ;;  %v1001_v15 = vshrl.u32 %v2711_v11, 16 }
  0x15   : > { %v400_v16 = vrot.slane %v398_v7, 4  ;;  %v403_v17 = vrot.slane %v401_v8, 5  ;;  %v409_v18 = vrot.slane %v407_v9, 5  ;;  %v413_v19 = vrot.slane %v411_v10, 4  ;;  %v2719_v20 = vld [vmem:[%s2697_s10 + $0xc] sm:$0xf] }
  0x16   : > { %v419_v21 = vrot.slane %v417_v12, 5  ;;  %v1003_v22 = vrot.slane %v1001_v15, 4  ;;  %v1004_v23 = vshll.u32 %v2711_v11, 16  ;;  %v1010_v24 = vshll.u32 %v2714_v13, 16  ;;  %v2725_v29 = vld [vmem:[%s2697_s10 + $0x10] sm:$0xf] }
  0x17   : > { %v404_v25 = vor.u32 %v403_v17, %v400_v16  ;;  %v414_v26 = vor.u32 %v413_v19, %v409_v18  ;;  %v1014_v27 = vshrl.u32 %v2714_v13, 16  ;;  %v1020_v28 = vshll.u32 %v2222_v14, 16  ;;  %v387_v39 = vld [vmem:[%s2697_s10 + $0x14] sm:$0x1]  ;;  %v2738_v44 = vld [vmem:[%s2697_s10 + $0x18] sm:$0xf] }
  0x18   : > { %v1006_v31 = vrot.slane %v1004_v23, 5  ;;  %v1012_v32 = vrot.slane %v1010_v24, 5  ;;  %v422_v33 = vshrl.u32 %v2719_v20, 16  ;;  %v425_v34 = vshll.u32 %v2719_v20, 16  ;;  %v2746_v49 = vld [vmem:[%s2697_s10 + $0x1c] sm:$0xf] }
  0x19   : > { %v405_v35 = vrot.slane %v404_v25, 4  ;;  %v415_v36 = vrot.slane %v414_v26, 4  ;;  %v1016_v37 = vrot.slane %v1014_v27, 4  ;;  %v1022_v38 = vrot.slane %v1020_v28, 5  ;;  %v388_v57 = vld [vmem:[%s2697_s10 + $0x20] sm:$0x1] }
  0x1a   : > { %v1007_v40 = vor.u32 %v1006_v31, %v1003_v22  ;;  %v424_v41 = vrot.slane %v422_v33, 4  ;;  %v427_v42 = vrot.slane %v425_v34, 5  ;;  %v431_v43 = vshll.u32 %v2725_v29, 16  ;;  %v2756_v63 = vld [vmem:[%s2697_s10 + $0x30] sm:$0xf]  ;;  %s2294_s7 = sshll.u32 %s3415_s21, 6 }
  0x1b   : > { %v410_v45 = vsel %vm2729_vm4, %v405_v35, %v409_v18  ;;  %v420_v46 = vsel %vm2729_vm4, %v415_v36, %v419_v21  ;;  %v1017_v47 = vor.u32 %v1016_v37, %v1012_v32  ;;  %v435_v48 = vshrl.u32 %v2725_v29, 16  ;;  %v2506_v6 = vld [vmem:[%s3403_s2 + $0x10] sm:$0xff]   ;;  %v2223_v21 = vld [vmem:[%s2697_s10 + $0x38] sm:$0x1]  ;;  %v2776_v27 = vld [vmem:[%s2697_s10 + $0x24] sm:$0xf]  ;;  %s3319_s9 = scalar_lea.vmem %s3407_s6, %s2294_s7 }
  0x1c   : > { %v2172_v50 = vcombine.low %v410_v45, %v420_v46  ;;  %v1008_v51 = vrot.slane %v1007_v40, 4  ;;  %v428_v52 = vor.u32 %v427_v42, %v424_v41  ;;  %v433_v53 = vrot.slane %v431_v43, 5  ;;  %v2764_v10 = vld [vmem:[%s2697_s10 + $0x34] sm:$0xf]  ;;  %v2783_v34 = vld [vmem:[%s2697_s10 + $0x28] sm:$0xf] }
  0x1d   : > { %v1018_v54 = vrot.slane %v1017_v47, 4  ;;  %v437_v55 = vrot.slane %v435_v48, 4  ;;  %v441_v56 = vshll.u32 %v387_v39, 16  ;;  %v446_v58 = vshrl.u32 %v2738_v44, 16  ;;  %v389_v46 = vld [vmem:[%s2697_s10 + $0x2c] sm:$0x1] }
  0x1e   : > { %2351 = vmatprep.mubr.msk.bf16.mxu0 %vm624_vm3, %v2172_v50  ;;  %v1013_v59 = vsel %vm2729_vm4, %v1008_v51, %v1012_v32  ;;  %v429_v60 = vrot.slane %v428_v52, 4  ;;  %v449_v61 = vshll.u32 %v2738_v44, 16  ;;  %v455_v62 = vshll.u32 %v2746_v49, 16  ;;  %v2793_v50 = vld [vmem:[%s2697_s10 + $0x30] sm:$0xf] }
  0x1f   : > { %v1023_v2 = vsel %vm2729_vm4, %v1018_v54, %v1022_v38  ;;  %v438_v7 = vor.u32 %v437_v55, %v433_v53  ;;  %v443_v8 = vrot.slane %v441_v56, 5  ;;  %v448_v9 = vrot.slane %v446_v58, 4 }
  0x20   : > { %v2233_v12 = vcombine.low %v1013_v59, %v1023_v2  ;;  %v434_v14 = vsel %vm2729_vm4, %v429_v60, %v433_v53  ;;  %v451_v15 = vrot.slane %v449_v61, 5  ;;  %v457_v16 = vrot.slane %v455_v62, 5  ;;  %v2801_v62 = vld [vmem:[%s2697_s10 + $0x34] sm:$0xf] }
  0x21   : > { %v439_v17 = vrot.slane %v438_v7, 4  ;;  %v459_v18 = vshrl.u32 %v2746_v49, 16  ;;  %v465_v19 = vshll.u32 %v388_v57, 16  ;;  %v1025_v22 = vshrl.u32 %v2756_v63, 16 }
  0x22   : > { %2396 = vmatmul.mubr.msk.bf16.vlgmr.msra.gmra.mrb[0].mxu1 %vm624_vm3, %v2233_v12  ;;  %v452_v23 = vor.u32 %v451_v15, %v448_v9  ;;  %v1028_v24 = vshll.u32 %v2756_v63, 16  ;;  %v1034_v25 = vshll.u32 %v2764_v10, 16  ;;  %v1038_v26 = vshrl.u32 %v2764_v10, 16  ;;  %v390_v9 = vld [vmem:[%s2697_s10 + $0x38] sm:$0x1] }
  0x23   : > { %2416 = vmatpush3.bf16.msra.mxu1 %v2506_v6  ;;  %v444_v28 = vsel %vm2729_vm4, %v439_v17, %v443_v8  ;;  %2399 = vmatprep.mubr.msk.bf16.mxu1 %vm2616_vm0, %v2615_v1  ;;  %v461_v31 = vrot.slane %v459_v18, 4  ;;  %v467_v32 = vrot.slane %v465_v19, 5  ;;  %v1027_v33 = vrot.slane %v1025_v22, 4  ;;  %v2808_v12 = vld [vmem:[%s2697_s10 + $0x3c] sm:$0xf] }
  0x24   : > { %v2173_v35 = vcombine.low %v434_v14, %v444_v28  ;;  %v453_v36 = vrot.slane %v452_v23, 4  ;;  %v1030_v37 = vrot.slane %v1028_v24, 5  ;;  %v1036_v38 = vrot.slane %v1034_v25, 5 }
  0x25   : > { %v462_v39 = vor.u32 %v461_v31, %v457_v16  ;;  %v1040_v40 = vrot.slane %v1038_v26, 4  ;;  %v1044_v41 = vshll.u32 %v2223_v21, 16  ;;  %v470_v42 = vshrl.u32 %v2776_v27, 16  ;;  %v2817_v26 = vld [vmem:[%s2697_s10 + $0x40] sm:$0xf] }
  0x26   : > { %2352 = vmatmul.mubr.msk.bf16.vlgmr.msra.gmra.mrb[0].mxu0 %vm624_vm3, %v2173_v35  ;;  %v458_v43 = vsel %vm2729_vm4, %v453_v36, %v457_v16  ;;  %v1031_v45 = vor.u32 %v1030_v37, %v1027_v33  ;;  %v473_v47 = vshll.u32 %v2776_v27, 16  ;;  %v479_v48 = vshll.u32 %v2783_v34, 16  ;;  %v2224_v35 = vld [vmem:[%s2697_s10 + $0x44] sm:$0x1] }
  0x27   : > { %2368 = vmatpush3.bf16.msra.mxu0 %v2688_v3  ;;  %v463_v51 = vrot.slane %v462_v39, 4  ;;  %v1041_v52 = vor.u32 %v1040_v40, %v1036_v38  ;;  %v1046_v53 = vrot.slane %v1044_v41, 5  ;;  %v472_v54 = vrot.slane %v470_v42, 4  ;;  %v2828_v41 = vld [vmem:[%s2697_s10 + $0x3c] sm:$0xf] }
  0x28   : > { %v1032_v55 = vrot.slane %v1031_v45, 4  ;;  %v475_v56 = vrot.slane %v473_v47, 5  ;;  %v481_v57 = vrot.slane %v479_v48, 5  ;;  %v483_v58 = vshrl.u32 %v2783_v34, 16  ;;  %2385 = vmatprep.subr.bf16.mxu0 %v2615_v1 }
  0x29   : > { %v468_v59 = vsel %vm2729_vm4, %v463_v51, %v467_v32  ;;  %v1042_v60 = vrot.slane %v1041_v52, 4  ;;  %v489_v61 = vshll.u32 %v389_v46, 16  ;;  %v494_v3 = vshrl.u32 %v2793_v50, 16 }
  0x2a   : > { %v2174_v2 = vcombine.low %v458_v43, %v468_v59  ;;  %v1037_v6 = vsel %vm2729_vm4, %v1032_v55, %v1036_v38  ;;  %v476_v7 = vor.u32 %v475_v56, %v472_v54  ;;  %v485_v8 = vrot.slane %v483_v58, 4  ;;  %v391_v54 = vld [vmem:[%s2697_s10 + $0x44] sm:$0x1]  ;;  %v2842_v59 = vld [vmem:[%s2697_s10 + $0x48] sm:$0xf] }
  0x2b   : > { %v1047_v14 = vsel %vm2729_vm4, %v1042_v60, %v1046_v53  ;;  %v491_v15 = vrot.slane %v489_v61, 5  ;;  %v496_v16 = vrot.slane %v494_v3, 4  ;;  %v497_v17 = vshll.u32 %v2793_v50, 16  ;;  %v2837_v53 = vld [vmem:[%s2697_s10 + $0x40] sm:$0xf] }
  0x2c   : > { %2355 = vmatprep.mubr.msk.bf16.mxu0 %vm624_vm3, %v2174_v2  ;;  %v2234_v18 = vcombine.low %v1037_v6, %v1047_v14  ;;  %v477_v19 = vrot.slane %v476_v7, 4  ;;  %v486_v21 = vor.u32 %v485_v8, %v481_v57  ;;  %v503_v22 = vshll.u32 %v2801_v62, 16  ;;  %v2854_v6 = vld [vmem:[%s2697_s10 + $0x4c] sm:$0xf] }
  0x2d   : > { %v499_v23 = vrot.slane %v497_v17, 5  ;;  %v507_v24 = vshrl.u32 %v2801_v62, 16  ;;  %v513_v25 = vshll.u32 %v390_v9, 16  ;;  %v1049_v28 = vshrl.u32 %v2808_v12, 16 }
  0x2e   : > { %2400 = vmatmul.mubr.msk.bf16.gmra.mrb[4].mxu1 %vm624_vm3, %v2234_v18  ;;  %v482_v31 = vsel %vm2729_vm4, %v477_v19, %v481_v57  ;;  %v487_v32 = vrot.slane %v486_v21, 4  ;;  %v505_v33 = vrot.slane %v503_v22, 5  ;;  %v1052_v36 = vshll.u32 %v2808_v12, 16 }
  0x2f   : > { %2403 = vmatprep.mubr.msk.bf16.mxu1 %vm2616_vm0, %v2615_v1  ;;  %v500_v37 = vor.u32 %v499_v23, %v496_v16  ;;  %v509_v38 = vrot.slane %v507_v24, 4  ;;  %v515_v39 = vrot.slane %v513_v25, 5  ;;  %v1051_v40 = vrot.slane %v1049_v28, 4 }
  0x30   : > { %v492_v42 = vsel %vm2729_vm4, %v487_v32, %v491_v15  ;;  %v1054_v43 = vrot.slane %v1052_v36, 5  ;;  %v1058_v45 = vshll.u32 %v2817_v26, 16  ;;  %v1062_v46 = vshrl.u32 %v2817_v26, 16 }
  0x31   : > { %v2175_v47 = vcombine.low %v482_v31, %v492_v42  ;;  %v501_v48 = vrot.slane %v500_v37, 4  ;;  %v510_v51 = vor.u32 %v509_v38, %v505_v33  ;;  %v1068_v52 = vshll.u32 %v2224_v35, 16  ;;  %v392_v31 = vld [vmem:[%s2697_s10 + $0x50] sm:$0x1]  ;;  %v2871_v38 = vld [vmem:[%s2697_s10 + $0x48] sm:$0xf] }
  0x32   : > { %v1055_v55 = vor.u32 %v1054_v43, %v1051_v40  ;;  %v1060_v56 = vrot.slane %v1058_v45, 5  ;;  %v1064_v57 = vrot.slane %v1062_v46, 4  ;;  %v518_v58 = vshrl.u32 %v2828_v41, 16  ;;  %v2874_v45 = vld [vmem:[%s2697_s10 + $0x4c] sm:$0xf] }
  0x33   : > { %2356 = vmatmul.mubr.msk.bf16.gmra.mrb[4].mxu0 %vm624_vm3, %v2175_v47  ;;  %v506_v60 = vsel %vm2729_vm4, %v501_v48, %v505_v33  ;;  %v511_v61 = vrot.slane %v510_v51, 4  ;;  %v1070_v3 = vrot.slane %v1068_v52, 5  ;;  %v521_v2 = vshll.u32 %v2828_v41, 16 }
  0x34   : > { %v1056_v7 = vrot.slane %v1055_v55, 4  ;;  %v1065_v8 = vor.u32 %v1064_v57, %v1060_v56  ;;  %v520_v9 = vrot.slane %v518_v58, 4  ;;  %v527_v14 = vshll.u32 %v2837_v53, 16 }
  0x35   : > { %v516_v15 = vsel %vm2729_vm4, %v511_v61, %v515_v39  ;;  %v523_v16 = vrot.slane %v521_v2, 5  ;;  %v531_v17 = vshrl.u32 %v2837_v53, 16  ;;  %v537_v18 = vshll.u32 %v391_v54, 16  ;;  %v2225_v61 = vld [vmem:[%s2697_s10 + $0x50] sm:$0x1] }
  0x36   : > { %v2176_v19 = vcombine.low %v506_v60, %v516_v15  ;;  %v1061_v21 = vsel %vm2729_vm4, %v1056_v7, %v1060_v56  ;;  %v1066_v22 = vrot.slane %v1065_v8, 4  ;;  %v529_v23 = vrot.slane %v527_v14, 5  ;;  %v2886_v2 = vld [vmem:[%s2697_s10 + $0x54] sm:$0xf]  ;;  %v2892_v15 = vld [vmem:[%s2697_s10 + $0x58] sm:$0xf] }
  0x37   : > { %v524_v24 = vor.u32 %v523_v16, %v520_v9  ;;  %v533_v25 = vrot.slane %v531_v17, 4  ;;  %v539_v28 = vrot.slane %v537_v18, 5  ;;  %v542_v32 = vshrl.u32 %v2842_v59, 16 }
  0x38   : > { %2359 = vmatprep.mubr.msk.bf16.mxu0 %vm624_vm3, %v2176_v19  ;;  %v1071_v33 = vsel %vm2729_vm4, %v1066_v22, %v1070_v3  ;;  %v545_v35 = vshll.u32 %v2842_v59, 16  ;;  %v551_v36 = vshll.u32 %v2854_v6, 16  ;;  %v555_v37 = vshrl.u32 %v2854_v6, 16 }
  0x39   : > { %v2235_v39 = vcombine.low %v1061_v21, %v1071_v33  ;;  %v525_v40 = vrot.slane %v524_v24, 4  ;;  %v534_v42 = vor.u32 %v533_v25, %v529_v23  ;;  %v544_v43 = vrot.slane %v542_v32, 4 }
  0x3a   : > { %v547_v46 = vrot.slane %v545_v35, 5  ;;  %v553_v47 = vrot.slane %v551_v36, 5  ;;  %v557_v48 = vrot.slane %v555_v37, 4  ;;  %v561_v51 = vshll.u32 %v392_v31, 16  ;;  %v393_v31 = vld [vmem:[%s2697_s10 + $0x5c] sm:$0x1] }
  0x3b   : > { %2404 = vmatmul.mubr.msk.bf16.gmra.mrb[8].mxu1 %vm624_vm3, %v2235_v39  ;;  %v530_v52 = vsel %vm2729_vm4, %v525_v40, %v529_v23  ;;  %v535_v54 = vrot.slane %v534_v42, 4  ;;  %v1073_v55 = vshrl.u32 %v2871_v38, 16  ;;  %v1076_v56 = vshll.u32 %v2871_v38, 16  ;;  %v2904_v35 = vld [vmem:[%s2697_s10 + $0x54] sm:$0xf] }
  0x3c   : > { %2407 = vmatprep.mubr.msk.bf16.mxu1 %vm2616_vm0, %v2615_v1  ;;  %v548_v57 = vor.u32 %v547_v46, %v544_v43  ;;  %v558_v58 = vor.u32 %v557_v48, %v553_v47  ;;  %v563_v60 = vrot.slane %v561_v51, 5  ;;  %v1082_v3 = vshll.u32 %v2874_v45, 16  ;;  %v2907_v42 = vld [vmem:[%s2697_s10 + $0x58] sm:$0xf] }
  0x3d   : > { %v540_v7 = vsel %vm2729_vm4, %v535_v54, %v539_v28  ;;  %v1075_v8 = vrot.slane %v1073_v55, 4  ;;  %v1078_v9 = vrot.slane %v1076_v56, 5  ;;  %v1086_v14 = vshrl.u32 %v2874_v45, 16 }
  0x3e   : > { %v2177_v16 = vcombine.low %v530_v52, %v540_v7  ;;  %v549_v17 = vrot.slane %v548_v57, 4  ;;  %v559_v18 = vrot.slane %v558_v58, 4  ;;  %v1084_v19 = vrot.slane %v1082_v3, 5  ;;  %v2226_v58 = vld [vmem:[%s2697_s10 + $0x5c] sm:$0x1] }
  0x3f   : > { %v1079_v21 = vor.u32 %v1078_v9, %v1075_v8  ;;  %v1088_v22 = vrot.slane %v1086_v14, 4  ;;  %v1092_v23 = vshll.u32 %v2225_v61, 16  ;;  %v566_v24 = vshrl.u32 %v2886_v2, 16 }
  0x40   : > { %2360 = vmatmul.mubr.msk.bf16.gmra.mrb[8].mxu0 %vm624_vm3, %v2177_v16  ;;  %v554_v25 = vsel %vm2729_vm4, %v549_v17, %v553_v47  ;;  %v564_v28 = vsel %vm2729_vm4, %v559_v18, %v563_v60  ;;  %v569_v32 = vshll.u32 %v2886_v2, 16  ;;  %v575_v33 = vshll.u32 %v2892_v15, 16 }
  0x41   : > { %v2178_v36 = vcombine.low %v554_v25, %v564_v28  ;;  %v1080_v37 = vrot.slane %v1079_v21, 4  ;;  %v1089_v39 = vor.u32 %v1088_v22, %v1084_v19  ;;  %v1094_v40 = vrot.slane %v1092_v23, 5 }
  0x42   : > { %v568_v43 = vrot.slane %v566_v24, 4  ;;  %v571_v46 = vrot.slane %v569_v32, 5  ;;  %v577_v47 = vrot.slane %v575_v33, 5  ;;  %v579_v48 = vshrl.u32 %v2892_v15, 16 }
  0x43   : > { %2363 = vmatprep.mubr.msk.bf16.mxu0 %vm624_vm3, %v2178_v36  ;;  %v1085_v51 = vsel %vm2729_vm4, %v1080_v37, %v1084_v19  ;;  %v1090_v52 = vrot.slane %v1089_v39, 4  ;;  %v585_v54 = vshll.u32 %v393_v31, 16  ;;  %v1097_v55 = vshrl.u32 %v2904_v35, 16  ;;  %v2926_v31 = vld [vmem:[%s2697_s10 + $0xc] sm:$0xf] }
  0x44   : > { %v572_v56 = vor.u32 %v571_v46, %v568_v43  ;;  %v581_v57 = vrot.slane %v579_v48, 4  ;;  %v1100_v60 = vshll.u32 %v2904_v35, 16  ;;  %v1106_v61 = vshll.u32 %v2907_v42, 16  ;;  %v2207_v36 = vld [vmem:[%s2697_s10 + $0x10] sm:$0xf] }
  0x45   : > { %v1095_v3 = vsel %vm2729_vm4, %v1090_v52, %v1094_v40  ;;  %v587_v7 = vrot.slane %v585_v54, 5  ;;  %v1099_v8 = vrot.slane %v1097_v55, 4  ;;  %v1110_v9 = vshrl.u32 %v2907_v42, 16  ;;  %v2208_v54 = vld [vmem:[%s2697_s10 + $0x18] sm:$0xf] }
  0x46   : > { %v2236_v14 = vcombine.low %v1085_v51, %v1095_v3  ;;  %v573_v16 = vrot.slane %v572_v56, 4  ;;  %v582_v17 = vor.u32 %v581_v57, %v577_v47  ;;  %v1102_v18 = vrot.slane %v1100_v60, 5 }
  0x47   : > { %v1108_v19 = vrot.slane %v1106_v61, 5  ;;  %v1112_v21 = vrot.slane %v1110_v9, 4  ;;  %v1116_v22 = vshll.u32 %v2226_v58, 16  ;;  %v2189_v25 = vcombine.low %v2700_v4, %v2703_v5  ;;  %v2209_v58 = vld [vmem:[%s2697_s10 + $0x1c] sm:$0xf] }
  0x48   : > { %2408 = vmatmul.mubr.msk.bf16.gmra.mrb[12].mxu1 %vm624_vm3, %v2236_v14  ;;  %v578_v23 = vsel %vm2729_vm4, %v573_v16, %v577_v47  ;;  %v583_v24 = vrot.slane %v582_v17, 4  ;;  %v1103_v28 = vor.u32 %v1102_v18, %v1099_v8  ;;  %v953_v37 = vshrl.u32 %v2926_v31, 16  ;;  %v2220_v16 = vld [vmem:[%s2697_s10 + $0x14] sm:$0x1] }
  0x49   : > { %2411 = vmatprep.mubr.msk.bf16.mxu1 %vm2616_vm0, %v2615_v1  ;;  %v1113_v32 = vor.u32 %v1112_v21, %v1108_v19  ;;  %v1118_v33 = vrot.slane %v1116_v22, 5  ;;  %v956_v39 = vshll.u32 %v2926_v31, 16  ;;  %v962_v4 = vshll.u32 %v2207_v36, 16  ;;  %v2221_v22 = vld [vmem:[%s2697_s10 + $0x20] sm:$0x1] }
  0x4a   : > { %v588_v40 = vsel %vm2729_vm4, %v583_v24, %v587_v7  ;;  %v1104_v43 = vrot.slane %v1103_v28, 4  ;;  %v966_v5 = vshrl.u32 %v2207_v36, 16  ;;  %v955_v51 = vrot.slane %v953_v37, 4 }
  0x4b   : > { %v2179_v46 = vcombine.low %v578_v23, %v588_v40  ;;  %v1114_v47 = vrot.slane %v1113_v32, 4  ;;  %v958_v52 = vrot.slane %v956_v39, 5  ;;  %v964_v56 = vrot.slane %v962_v4, 5 }
  0x4c   : > { %v1109_v48 = vsel %vm2729_vm4, %v1104_v43, %v1108_v19  ;;  %v968_v57 = vrot.slane %v966_v5, 4  ;;  %v977_v60 = vshrl.u32 %v2208_v54, 16  ;;  %v980_v3 = vshll.u32 %v2208_v54, 16 }
  0x4d   : > { %2364 = vmatmul.mubr.msk.bf16.gmra.mrb[12].mxu0 %vm624_vm3, %v2179_v46  ;;  %v1119_v55 = vsel %vm2729_vm4, %v1114_v47, %v1118_v33  ;;  %v986_v7 = vshll.u32 %v2209_v58, 16  ;;  %v990_v8 = vshrl.u32 %v2209_v58, 16  ;;  %v2190_v9 = vcombine.low %v2719_v20, %v2725_v29  ;;  %v2525_v46 = vld [vmem:[%s3403_s2 + $0x10] sm:$0xff]  }
  0x4e   : > { %2369 = vmatprep.mubr.msk.bf16.mxu0 %vm624_vm3, %v2189_v25  ;;  %v2237_v61 = vcombine.low %v1109_v48, %v1119_v55  ;;  %v979_v14 = vrot.slane %v977_v60, 4  ;;  %v982_v17 = vrot.slane %v980_v3, 5  ;;  %v2248_v21 = vcombine.low %v2711_v11, %v2714_v13 }
  0x4f   : > { %v988_v18 = vrot.slane %v986_v7, 5  ;;  %v992_v19 = vrot.slane %v990_v8, 4  ;;  %v2191_v23 = vcombine.low %v2738_v44, %v2746_v49  ;;  %v2249_v20 = vcombine.low %v2756_v63, %v2764_v10 }
  0x50   : > { %2412 = vmatmul.mubr.msk.bf16.gmra.mrb[16].mxu1 %vm624_vm3, %v2237_v61  ;;  %v959_v29 = vor.u32 %v958_v52, %v955_v51  ;;  %v969_v24 = vor.u32 %v968_v57, %v964_v56  ;;  %v972_v25 = vshll.u32 %v2220_v16, 16  ;;  %v2250_v28 = vcombine.low %v2808_v12, %v2817_v26 }
  0x51   : > { %2417 = vmatprep.mubr.msk.bf16.mxu1 %vm2616_vm0, %v2615_v1  ;;  %v983_v32 = vor.u32 %v982_v17, %v979_v14  ;;  %v993_v33 = vor.u32 %v992_v19, %v988_v18  ;;  %v996_v13 = vshll.u32 %v2221_v22, 16  ;;  %v2251_v39 = vcombine.low %v2871_v38, %v2874_v45 }
  0x52   : > { %v960_v37 = vrot.slane %v959_v29, 4  ;;  %v970_v11 = vrot.slane %v969_v24, 4  ;;  %v2246_v40 = vcombine.low %v2926_v31, %v2207_v36  ;;  %v974_v44 = vrot.slane %v972_v25, 5 }
  0x53   : > { %v984_v49 = vrot.slane %v983_v32, 4  ;;  %v994_v43 = vrot.slane %v993_v33, 4  ;;  %v998_v10 = vrot.slane %v996_v13, 5  ;;  %v2252_v38 = vcombine.low %v2904_v35, %v2907_v42 }
  0x54   : > { %v965_v63 = vsel %vm2729_vm4, %v960_v37, %v964_v56  ;;  %v975_v12 = vsel %vm2729_vm4, %v970_v11, %v974_v44  ;;  %v2192_v36 = vcombine.low %v2776_v27, %v2783_v34  ;;  %v2193_v4 = vcombine.low %v2793_v50, %v2801_v62  ;;  %v2520_v50 = vld [vmem:[%s3403_s2 + $0x18] sm:$0xff]   ;;  %v2523_v62 = vld [vmem:[%s2847_s16] sm:$0xff]  }
  0x55   : > { %2370 = vmatmul.mubr.msk.bf16.vlgmr.msra.gmra.mrb[0].mxu0 %vm624_vm3, %v2190_v9  ;;  %v989_v26 = vsel %vm2729_vm4, %v984_v49, %v988_v18  ;;  %v2231_v45 = vcombine.low %v965_v63, %v975_v12  ;;  %v999_v31 = vsel %vm2729_vm4, %v994_v43, %v998_v10  ;;  %v2247_v5 = vcombine.low %v2208_v54, %v2209_v58 }
  0x56   : > { %2386 = vmatpush3.bf16.msra.mxu0 %v2673_v0  ;;  %2373 = vmatprep.mubr.msk.bf16.mxu0 %vm624_vm3, %v2191_v23  ;;  %v2232_v0 = vcombine.low %v989_v26, %v999_v31  ;;  %v2194_v30 = vcombine.low %v2828_v41, %v2837_v53  ;;  %v2195_v27 = vcombine.low %v2842_v59, %v2854_v6  ;;  %v2524_v41 = vld [vmem:[%s2847_s16 + $0x8] ss:$0 sps:$4 sm:$0x11]   ;;  %v1477_v53 = vshll.u32 %v2523_v62, 16 }
  0x57   : > { %2445 = vmatprep.subr.bf16.mxu0 %v2615_v1  ;;  %v2196_v34 = vcombine.low %v2886_v2, %v2892_v15  ;;  %v1475_v59 = vshrl.u32 %v2523_v62, 16  ;;  %v1482_v2 = vshll.u32 %v2524_v41, 16 }
  0x58   : > { %2418 = vmatmul.mubr.msk.bf16.vlgmr.msra.gmra.mrb[20].mxu1 %vm624_vm3, %v2246_v40  ;;  %v1479_v6 = vrot.slane %v1477_v53, 1 }
  0x59   : > { %2421 = vmatprep.mubr.msk.bf16.mxu1 %vm2616_vm0, %v2615_v1  ;;  %v1484_v35 = vrot.slane %v1482_v2, 1  ;;  %v3074_v2 = vld [vmem:[%s3404_s3] ss:$0 sm:$0xff] }
  0x5a   : > { %v1480_v15 = vor.u32 %v1479_v6, %v1475_v59 }
  0x5c   : > { %v1485_v42 = vsel %vm1473_vm5, %v1480_v15, %v1484_v35 }
  0x5d   : > { %2374 = vmatmul.mubr.msk.bf16.gmra.mrb[4].mxu0 %vm624_vm3, %v2192_v36 }
  0x5e   : > { %2377 = vmatprep.mubr.msk.bf16.mxu0 %vm624_vm3, %v2193_v4 }
  0x60   : > { %2422 = vmatmul.mubr.msk.bf16.gmra.mrb[24].mxu1 %vm624_vm3, %v2247_v5 }
  0x61   : > { %2425 = vmatprep.mubr.msk.bf16.mxu1 %vm2616_vm0, %v2615_v1 }
  0x65   : > { %2378 = vmatmul.mubr.msk.bf16.gmra.mrb[8].mxu0 %vm624_vm3, %v2194_v30 }
  0x66   : > { %2381 = vmatprep.mubr.msk.bf16.mxu0 %vm624_vm3, %v2195_v27 }
  0x68   : > { %2426 = vmatmul.mubr.msk.bf16.gmra.mrb[28].mxu1 %vm624_vm3, %v2248_v21 }
  0x69   : > { %2429 = vmatprep.mubr.msk.bf16.mxu1 %vm2616_vm0, %v2615_v1 }
  0x6d   : > { %2382 = vmatmul.mubr.msk.bf16.gmra.mrb[12].mxu0 %vm624_vm3, %v2196_v34 }
  0x6e   : > { %2387 = vmatprep.mubr.msk.bf16.mxu0 %vm2616_vm0, %v2615_v1 }
  0x70   : > { %2430 = vmatmul.mubr.msk.bf16.gmra.mrb[32].mxu1 %vm624_vm3, %v2249_v20 }
  0x71   : > { %2433 = vmatprep.mubr.msk.bf16.mxu1 %vm2616_vm0, %v2615_v1 }
  0x75   : > { %2388 = vmatmul.mubr.msk.bf16.vlgmr.msra.gmra.mrb[16].mxu0 %vm624_vm3, %v2231_v45 }
  0x76   : > { %2446 = vmatpush3.bf16.msra.mxu0 %v2520_v50  ;;  %2391 = vmatprep.mubr.msk.bf16.mxu0 %vm2616_vm0, %v2615_v1 }
  0x77   : > { %2451 = vmatprep.subr.bf16.mxu0 %v2615_v1 }
  0x78   : > { %2434 = vmatmul.mubr.msk.bf16.gmra.mrb[36].mxu1 %vm624_vm3, %v2250_v28 }
  0x79   : > { %2437 = vmatprep.mubr.msk.bf16.mxu1 %vm2616_vm0, %v2615_v1 }
  0x7d   : > { %2392 = vmatmul.mubr.msk.bf16.gmra.mrb[20].mxu0 %vm624_vm3, %v2232_v0 }
  0x7e   : > { %2447 = vmatprep.mubr.msk.bf16.mxu0 %vm2616_vm0, %v2615_v1 }
  0x80   : > { %2438 = vmatmul.mubr.msk.bf16.gmra.mrb[40].mxu1 %vm624_vm3, %v2251_v39 }
  0x81   : > { %2441 = vmatprep.mubr.msk.bf16.mxu1 %vm2616_vm0, %v2615_v1 }
  0x85   : > { %2448 = vmatmul.mubr.msk.bf16.vlgmr.msra.gmra.mrb[24].mxu0 %vm624_vm3, %v1485_v42 }
  0x86   : > { %2452 = vmatpush3.bf16.msra.mxu0 %v2525_v46  ;;  %2453 = vmatprep.mubr.msk.bf16.mxu0 %vm2616_vm0, %v2615_v1 }
  0x88   : > { %2442 = vmatmul.mubr.msk.bf16.gmra.mrb[44].mxu1 %vm624_vm3, %v2252_v38 }
  0x8d   : > { %2454 = vmatmul.mubr.msk.bf16.vlgmr.msra.gmra.mrb[28].mxu0 %vm624_vm3, %v2523_v62 }
  0xf5   : > { %v1238_v47 = vpop.f32.mrb[0].mxu1 }
  0xf6   : > { %v2397_v48 = vpop.f32.mrb[1].mxu1 }
  0xf7   : > { %v1241_v51 = vpop.f32.mrb[2].mxu1 }
  0xf8   : > { %v2398_v52 = vpop.f32.mrb[3].mxu1 }
 0x101   : > { %v3030_v54 = vpop.f32.mrb[4].mxu1 }
 0x102   : > { %v2401_v55 = vpop.f32.mrb[5].mxu1 }
 0x103   : > { %v3032_v56 = vpop.f32.mrb[6].mxu1 }
 0x104   : > { %v2402_v57 = vpop.f32.mrb[7].mxu1 }
 0x10e   : > { %v3034_v58 = vpop.f32.mrb[8].mxu1 }
 0x10f   : > { %v2405_v60 = vpop.f32.mrb[9].mxu1 }
 0x110   : > { %v3036_v61 = vpop.f32.mrb[10].mxu1 }
 0x111   : > { %v2406_v1 = vpop.f32.mrb[11].mxu1 }
 0x11b   : > { %v3038_v3 = vpop.f32.mrb[12].mxu1 }
 0x11c   : > { %v2409_v7 = vpop.f32.mrb[13].mxu1 }
 0x11d   : > { %v3040_v8 = vpop.f32.mrb[14].mxu1 }
 0x11e   : > { %v2410_v9 = vpop.f32.mrb[15].mxu1 }
 0x123   : > { %v3042_v14 = vpop.f32.mrb[16].mxu1 }
 0x124   : > { %v2413_v16 = vpop.f32.mrb[17].mxu1 }
 0x125   : > { %v3044_v17 = vpop.f32.mrb[18].mxu1 }
 0x126   : > { %v2414_v18 = vpop.f32.mrb[19].mxu1 }
 0x128   : > { %v2371_v19 = vpop.f32.mrb[0].mxu0 }
 0x129   : > { %916 = vst.msk [vmem:[#allocation2 + $0x10] sm:$0xff] %vm913_vm6, %v2371_v19  ;;  %v850_v21 = vpop.f32.mrb[1].mxu0 }
 0x12a   : > { %914 = vst.msk [vmem:[#allocation2] sm:$0xff] %vm913_vm6, %v850_v21  ;;  %v2372_v22 = vpop.f32.mrb[2].mxu0 }
 0x12b   : > { %917 = vst.msk [vmem:[#allocation2 + $0x18] sm:$0xff] %vm913_vm6, %v2372_v22  ;;  %v853_v23 = vpop.f32.mrb[3].mxu0  ;;  %v1373_v20 = vpop.f32.mrb[20].mxu1 }
 0x12c   : > { %915 = vst.msk [vmem:[#allocation2 + $0x8] sm:$0xff] %vm913_vm6, %v853_v23  ;;  %v2419_v29 = vpop.f32.mrb[21].mxu1 }
 0x12d   : > { %v3050_v24 = vpop.f32.mrb[22].mxu1 }
 0x12e   : > { %v2420_v25 = vpop.f32.mrb[23].mxu1 }
 0x130   : > { %v2375_v28 = vpop.f32.mrb[4].mxu0 }
 0x131   : > { %920 = vst.msk [vmem:[#allocation2 + $0x30] sm:$0xff] %vm913_vm6, %v2375_v28  ;;  %v866_v32 = vpop.f32.mrb[5].mxu0  ;;  %v1120_v60 = vld [vmem:[#allocation2] sm:$0xff] }
 0x132   : > { %918 = vst.msk [vmem:[#allocation2 + $0x20] sm:$0xff] %vm913_vm6, %v866_v32  ;;  %v2376_v33 = vpop.f32.mrb[6].mxu0 }
 0x133   : > { %921 = vst.msk [vmem:[#allocation2 + $0x38] sm:$0xff] %vm913_vm6, %v2376_v33  ;;  %v869_v37 = vpop.f32.mrb[7].mxu0  ;;  %v3055_v11 = vpop.f32.mrb[24].mxu1  ;;  %v1121_v21 = vld [vmem:[#allocation2 + $0x8] sm:$0xff] }
 0x134   : > { %919 = vst.msk [vmem:[#allocation2 + $0x28] sm:$0xff] %vm913_vm6, %v869_v37  ;;  %v2423_v13 = vpop.f32.mrb[25].mxu1 }
 0x135   : > { %v3058_v39 = vpop.f32.mrb[26].mxu1 }
 0x136   : > { %v2424_v40 = vpop.f32.mrb[27].mxu1 }
 0x138   : > { %v2379_v44 = vpop.f32.mrb[8].mxu0  ;;  %v1126_v59 = vld [vmem:[#allocation2 + $0x30] sm:$0xff] }
 0x139   : > { %924 = vst.msk [vmem:[#allocation2 + $0x50] sm:$0xff] %vm913_vm6, %v2379_v44  ;;  %v882_v49 = vpop.f32.mrb[9].mxu0  ;;  %v1124_v38 = vld [vmem:[#allocation2 + $0x20] sm:$0xff] }
 0x13a   : > { %922 = vst.msk [vmem:[#allocation2 + $0x40] sm:$0xff] %vm913_vm6, %v882_v49  ;;  %v2380_v43 = vpop.f32.mrb[10].mxu0  ;;  %v1127_v46 = vld [vmem:[#allocation2 + $0x38] sm:$0xff] }
 0x13b   : > { %925 = vst.msk [vmem:[#allocation2 + $0x58] sm:$0xff] %vm913_vm6, %v2380_v43  ;;  %v885_v63 = vpop.f32.mrb[11].mxu0  ;;  %v1389_v10 = vpop.f32.mrb[28].mxu1  ;;  %v1125_v4 = vld [vmem:[#allocation2 + $0x28] sm:$0xff] }
 0x13c   : > { %923 = vst.msk [vmem:[#allocation2 + $0x48] sm:$0xff] %vm913_vm6, %v885_v63  ;;  %v1390_v12 = vadd.f32 %v1389_v10, %v1238_v47  ;;  %v2427_v26 = vpop.f32.mrb[29].mxu1  ;;  %v1122_v10 = vld [vmem:[#allocation2 + $0x10] sm:$0xff] }
 0x13d   : > { %v1392_v45 = vpop.f32.mrb[30].mxu1 }
 0x13e   : > { %v1432_v31 = vadd.f32 %v1390_v12, %v1124_v38  ;;  %v1393_v0 = vadd.f32 %v1392_v45, %v1241_v51  ;;  %v2428_v36 = vpop.f32.mrb[31].mxu1 }
 0x13f   : > { %v1123_v36 = vld [vmem:[#allocation2 + $0x18] sm:$0xff] }
 0x140   : > { %1446 = vst.msk [vmem:[#allocation2 + $0x20] sm:$0xff] %vm913_vm6, %v1432_v31  ;;  %v2383_v5 = vpop.f32.mrb[12].mxu0  ;;  %v1433_v30 = vadd.f32 %v1393_v0, %v1125_v4 }
 0x141   : > { %928 = vst.msk [vmem:[#allocation2 + $0x70] sm:$0xff] %vm913_vm6, %v2383_v5  ;;  %v898_v27 = vpop.f32.mrb[13].mxu0  ;;  %v1128_v25 = vld [vmem:[#allocation2 + $0x40] sm:$0xff] }
 0x142   : > { %926 = vst.msk [vmem:[#allocation2 + $0x60] sm:$0xff] %vm913_vm6, %v898_v27  ;;  %1447 = vst.msk [vmem:[#allocation2 + $0x28] sm:$0xff] %vm913_vm6, %v1433_v30  ;;  %v2384_v34 = vpop.f32.mrb[14].mxu0 }
 0x143   : > { %929 = vst.msk [vmem:[#allocation2 + $0x78] sm:$0xff] %vm913_vm6, %v2384_v34  ;;  %v901_v50 = vpop.f32.mrb[15].mxu0  ;;  %v1397_v62 = vpop.f32.mrb[32].mxu1  ;;  %v1129_v37 = vld [vmem:[#allocation2 + $0x48] sm:$0xff]  ;;  %v1130_v34 = vld [vmem:[#allocation2 + $0x50] sm:$0xff] }
 0x144   : > { %927 = vst.msk [vmem:[#allocation2 + $0x68] sm:$0xff] %vm913_vm6, %v901_v50  ;;  %v1398_v41 = vadd.f32 %v1397_v62, %v3030_v54  ;;  %v2431_v53 = vpop.f32.mrb[33].mxu1 }
 0x145   : > { %v1400_v6 = vpop.f32.mrb[34].mxu1 }
 0x146   : > { %v1434_v15 = vadd.f32 %v1398_v41, %v1126_v59  ;;  %v1401_v35 = vadd.f32 %v1400_v6, %v3032_v56  ;;  %v2432_v42 = vpop.f32.mrb[35].mxu1 }
 0x147   : > { %v1593_v47 = vld [vmem:[#allocation2 + $0x20] sm:$0xff] }
 0x148   : > { %1448 = vst.msk [vmem:[#allocation2 + $0x30] sm:$0xff] %vm913_vm6, %v1434_v15  ;;  %v1222_v48 = vpop.f32.mrb[16].mxu0  ;;  %v1435_v51 = vadd.f32 %v1401_v35, %v1127_v46  ;;  %v3079_v52 = vadd.f32 %v3074_v2, %v1593_v47 }
 0x149   : > { %v1374_v54 = vadd.f32 %v1373_v20, %v1222_v48  ;;  %v2389_v55 = vpop.f32.mrb[17].mxu0  ;;  %v1594_v57 = vld [vmem:[#allocation2 + $0x28] sm:$0xff] }
 0x14a   : > { %1449 = vst.msk [vmem:[#allocation2 + $0x38] sm:$0xff] %vm913_vm6, %v1435_v51  ;;  %v1225_v1 = vpop.f32.mrb[18].mxu0  ;;  %v1640_v56 = vsel %vm913_vm6, %v3079_v52, 0.0  ;;  %v3085_v7 = vadd.f32 %v3074_v2, %v1594_v57 }
 0x14b   : > { %v1428_v9 = vadd.f32 %v1374_v54, %v1120_v60  ;;  %v1377_v16 = vadd.f32 %v3050_v24, %v1225_v1  ;;  %v2390_v18 = vpop.f32.mrb[19].mxu0  ;;  %v1405_v19 = vpop.f32.mrb[36].mxu1  ;;  %1641 = vadd.xlane.f32.xlu0 %v1640_v56 }
 0x14c   : > { %v1406_v22 = vadd.f32 %v1405_v19, %v3034_v58  ;;  %v2435_v23 = vpop.f32.mrb[37].mxu1  ;;  %v1643_v20 = vsel %vm913_vm6, %v3085_v7, 0.0 }
 0x14d   : > { %1442 = vst.msk [vmem:[#allocation2] sm:$0xff] %vm913_vm6, %v1428_v9  ;;  %v1429_v29 = vadd.f32 %v1377_v16, %v1121_v21  ;;  %v1408_v28 = vpop.f32.mrb[38].mxu1  ;;  %1644 = vadd.xlane.f32.xlu1 %v1643_v20  ;;  %v1132_v9 = vld [vmem:[#allocation2 + $0x60] sm:$0xff]  ;;  %v1133_v20 = vld [vmem:[#allocation2 + $0x68] sm:$0xff] }
 0x14e   : > { %v1436_v32 = vadd.f32 %v1406_v22, %v1128_v25  ;;  %v1409_v33 = vadd.f32 %v1408_v28, %v3036_v61  ;;  %v2436_v24 = vpop.f32.mrb[39].mxu1 }
 0x14f   : > { %1443 = vst.msk [vmem:[#allocation2 + $0x8] sm:$0xff] %vm913_vm6, %v1429_v29  ;;  %v1595_v13 = vld [vmem:[#allocation2 + $0x30] sm:$0xff] }
 0x150   : > { %1450 = vst.msk [vmem:[#allocation2 + $0x40] sm:$0xff] %vm913_vm6, %v1436_v32  ;;  %v1230_v58 = vpop.f32.mrb[20].mxu0  ;;  %v1437_v40 = vadd.f32 %v1409_v33, %v1129_v37  ;;  %v3096_v44 = vadd.f32 %v3074_v2, %v1595_v13  ;;  %v1459_v13 = vld [vmem:[#allocation2 + $0x70] sm:$0xff] }
 0x151   : > { %v1382_v49 = vadd.f32 %v3055_v11, %v1230_v58  ;;  %v2393_v43 = vpop.f32.mrb[21].mxu0  ;;  %v1596_v63 = vld [vmem:[#allocation2 + $0x38] sm:$0xff] }
 0x152   : > { %1451 = vst.msk [vmem:[#allocation2 + $0x48] sm:$0xff] %vm913_vm6, %v1437_v40  ;;  %v1233_v61 = vpop.f32.mrb[22].mxu0  ;;  %v1646_v12 = vsel %vm913_vm6, %v3096_v44, 0.0  ;;  %v3103_v26 = vadd.f32 %v3074_v2, %v1596_v63 }
 0x153   : > { %v1430_v38 = vadd.f32 %v1382_v49, %v1122_v10  ;;  %v1385_v45 = vadd.f32 %v3058_v39, %v1233_v61  ;;  %v2394_v31 = vpop.f32.mrb[23].mxu0  ;;  %v1413_v0 = vpop.f32.mrb[40].mxu1  ;;  %1647 = vadd.xlane.f32.xlu0 %v1646_v12  ;;  %v1460_v12 = vld [vmem:[#allocation2 + $0x78] sm:$0xff] }
 0x154   : > { %v1414_v11 = vadd.f32 %v1413_v0, %v3038_v3  ;;  %v2439_v4 = vpop.f32.mrb[41].mxu1  ;;  %v1649_v5 = vsel %vm913_vm6, %v3103_v26, 0.0  ;;  %v1589_v30 = vld [vmem:[#allocation2] sm:$0xff]  ;;  %v1131_v3 = vld [vmem:[#allocation2 + $0x58] sm:$0xff] }
 0x155   : > { %1444 = vst.msk [vmem:[#allocation2 + $0x10] sm:$0xff] %vm913_vm6, %v1430_v38  ;;  %v1431_v27 = vadd.f32 %v1385_v45, %v1123_v36  ;;  %v1416_v50 = vpop.f32.mrb[42].mxu1  ;;  %1650 = vadd.xlane.f32.xlu1 %v1649_v5  ;;  %v3111_v62 = vadd.f32 %v3074_v2, %v1589_v30 }
 0x156   : > { %v1438_v39 = vadd.f32 %v1414_v11, %v1130_v34  ;;  %v1417_v41 = vadd.f32 %v1416_v50, %v3040_v8  ;;  %v2440_v53 = vpop.f32.mrb[43].mxu1  ;;  %v1590_v59 = vld [vmem:[#allocation2 + $0x8] sm:$0xff] }
 0x157   : > { %1445 = vst.msk [vmem:[#allocation2 + $0x18] sm:$0xff] %vm913_vm6, %v1431_v27  ;;  %v1628_v6 = vsel %vm913_vm6, %v3111_v62, 0.0  ;;  %v3118_v15 = vadd.f32 %v3074_v2, %v1590_v59  ;;  %v1597_v46 = vld [vmem:[#allocation2 + $0x40] sm:$0xff] }
 0x158   : > { %1452 = vst.msk [vmem:[#allocation2 + $0x50] sm:$0xff] %vm913_vm6, %v1438_v39  ;;  %v1529_v35 = vpop.f32.mrb[24].mxu0  ;;  %v1439_v42 = vadd.f32 %v1417_v41, %v1131_v3  ;;  %1629 = vadd.xlane.f32.xlu0 %v1628_v6  ;;  %v3125_v55 = vadd.f32 %v3074_v2, %v1597_v46 }
 0x159   : > { %v2449_v47 = vpop.f32.mrb[25].mxu0  ;;  %v1631_v54 = vsel %vm913_vm6, %v3118_v15, 0.0  ;;  %v1598_v56 = vld [vmem:[#allocation2 + $0x48] sm:$0xff] }
 0x15a   : > { %1453 = vst.msk [vmem:[#allocation2 + $0x58] sm:$0xff] %vm913_vm6, %v1439_v42  ;;  %v1532_v8 = vpop.f32.mrb[26].mxu0  ;;  %v3137_v29 = vadd.f32 %v3074_v2, %v1598_v56 }
 0x15b   : > { %v2450_v48 = vpop.f32.mrb[27].mxu0  ;;  %v1421_v51 = vpop.f32.mrb[44].mxu1 }
 0x15c   : > { %v1422_v57 = vadd.f32 %v1421_v51, %v3042_v14  ;;  %1632 = vadd.xlane.f32.xlu0 %v1631_v54  ;;  %v2443_v60 = vpop.f32.mrb[45].mxu1  ;;  %v1591_v1 = vld [vmem:[#allocation2 + $0x10] sm:$0xff]  ;;  %v1652_v14 = vsel %vm913_vm6, %v3125_v55, 0.0  ;;  %v1655_v10 = vsel %vm913_vm6, %v3137_v29, 0.0 }
 0x15d   : > { %v3129_v16 = vadd.f32 %v3074_v2, %v1591_v1  ;;  %v1424_v18 = vpop.f32.mrb[46].mxu1 }
 0x15e   : > { %v1440_v19 = vadd.f32 %v1422_v57, %v1132_v9  ;;  %v1425_v21 = vadd.f32 %v1424_v18, %v3044_v17  ;;  %v2444_v22 = vpop.f32.mrb[47].mxu1  ;;  %v1592_v33 = vld [vmem:[#allocation2 + $0x18] sm:$0xff] }
 0x15f   : > { %v1634_v23 = vsel %vm913_vm6, %v3129_v16, 0.0  ;;  %v1599_v25 = vld [vmem:[#allocation2 + $0x50] sm:$0xff]  ;;  %v3149_v61 = vadd.f32 %v3074_v2, %v1592_v33 }
 0x160   : > { %1454 = vst.msk [vmem:[#allocation2 + $0x60] sm:$0xff] %vm913_vm6, %v1440_v19  ;;  %1635 = vadd.xlane.f32.xlu1 %v1634_v23  ;;  %v1578_v28 = vpop.f32.mrb[28].mxu0  ;;  %v1441_v32 = vadd.f32 %v1425_v21, %v1133_v20  ;;  %1653 = vadd.xlane.f32.xlu0 %v1652_v14  ;;  %v3141_v17 = vadd.f32 %v3074_v2, %v1599_v25 }
 0x161   : > { %v1579_v24 = vadd.f32 %v1578_v28, %v1529_v35  ;;  %v2455_v37 = vpop.f32.mrb[29].mxu0  ;;  %v1600_v38 = vld [vmem:[#allocation2 + $0x58] sm:$0xff]  ;;  %v1637_v31 = vsel %vm913_vm6, %v3149_v61, 0.0 }
 0x162   : > { %1455 = vst.msk [vmem:[#allocation2 + $0x68] sm:$0xff] %vm913_vm6, %v1441_v32  ;;  %v1581_v58 = vpop.f32.mrb[30].mxu0  ;;  %v1658_v40 = vsel %vm913_vm6, %v3141_v17, 0.0  ;;  %v3156_v0 = vadd.f32 %v3074_v2, %v1600_v38 }
 0x163   : > { %v1585_v49 = vadd.f32 %v1579_v24, %v1459_v13  ;;  %v1582_v43 = vadd.f32 %v1581_v58, %v1532_v8  ;;  %v2456_v63 = vpop.f32.mrb[31].mxu0 }
 0x164   : > { %1656 = vadd.xlane.f32.xlu1 %v1655_v10  ;;  %1659 = vadd.xlane.f32.xlu0 %v1658_v40  ;;  %v1661_v27 = vsel %vm913_vm6, %v3156_v0, 0.0 }
 0x165   : > { %1587 = vst.msk [vmem:[#allocation2 + $0x70] sm:$0xff] %vm913_vm6, %v1585_v49  ;;  %v1586_v45 = vadd.f32 %v1582_v43, %v1460_v12 }
 0x167   : > { %1588 = vst.msk [vmem:[#allocation2 + $0x78] sm:$0xff] %vm913_vm6, %v1586_v45  ;;  %v1601_v36 = vld [vmem:[#allocation2 + $0x60] sm:$0xff] }
 0x168   : > { %1638 = vadd.xlane.f32.xlu1 %v1637_v31  ;;  %v3159_v11 = vadd.f32 %v3074_v2, %v1601_v36 }
 0x169   : > { %v1602_v4 = vld [vmem:[#allocation2 + $0x68] sm:$0xff] }
 0x16a   : > { %v1664_v5 = vsel %vm913_vm6, %v3159_v11, 0.0  ;;  %v3164_v30 = vadd.f32 %v3074_v2, %v1602_v4 }
 0x16b   : > { %1665 = vadd.xlane.f32.xlu0 %v1664_v5 }
 0x16c   : > { %1662 = vadd.xlane.f32.xlu1 %v1661_v27  ;;  %v1603_v34 = vld [vmem:[#allocation2 + $0x70] sm:$0xff]  ;;  %v1667_v50 = vsel %vm913_vm6, %v3164_v30, 0.0 }
 0x16d   : > { %v3171_v39 = vadd.f32 %v3074_v2, %v1603_v34 }
 0x16e   : > { %v1604_v41 = vld [vmem:[#allocation2 + $0x78] sm:$0xff] }
 0x16f   : > { %v1670_v53 = vsel %vm913_vm6, %v3171_v39, 0.0  ;;  %v3176_v59 = vadd.f32 %v3074_v2, %v1604_v41 }
 0x170   : > { %1668 = vadd.xlane.f32.xlu1 %v1667_v50  ;;  %1671 = vadd.xlane.f32.xlu0 %v1670_v53 }
 0x171   : > { %v1673_v3 = vsel %vm913_vm6, %v3176_v59, 0.0 }
 0x174   : > { %1674 = vadd.xlane.f32.xlu1 %v1673_v3 }
 0x1d8   : > { %v1642_v6 = vpop.xlane.xlu0 %1641 }
 0x1d9   : > { %v1681_v35 = vmul.f32 0.25, %v1642_v6 }
 0x1da   : > { %v1645_v42 = vpop.xlane.xlu1 %1644 }
 0x1db   : > { %v3181_v46 = vsub.f32 %v3079_v52, %v1681_v35  ;;  %v1682_v47 = vmul.f32 0.25, %v1645_v42 }
 0x1dd   : > { %v3184_v8 = vsub.f32 %v3085_v7, %v1682_v47  ;;  %v1713_v2 = vmul.f32 %v3181_v46, %v3181_v46 }
 0x1df   : > { %v1737_v48 = vsel %vm913_vm6, %v1713_v2, 0.0  ;;  %v1714_v51 = vmul.f32 %v3184_v8, %v3184_v8 }
 0x1e0   : > { %v1648_v54 = vpop.xlane.xlu0 %1647  ;;  %1738 = vadd.xlane.f32.xlu0 %v1737_v48 }
 0x1e1   : > { %v1683_v57 = vmul.f32 0.25, %v1648_v54  ;;  %v1740_v60 = vsel %vm913_vm6, %v1714_v51, 0.0 }
 0x1e2   : > { %v1651_v1 = vpop.xlane.xlu1 %1650  ;;  %1741 = vadd.xlane.f32.xlu1 %v1740_v60 }
 0x1e3   : > { %v3193_v52 = vsub.f32 %v3096_v44, %v1683_v57  ;;  %v1684_v7 = vmul.f32 0.25, %v1651_v1 }
 0x1e5   : > { %v3196_v56 = vsub.f32 %v3103_v26, %v1684_v7  ;;  %v1630_v9 = vpop.xlane.xlu0 %1629  ;;  %v1715_v18 = vmul.f32 %v3193_v52, %v3193_v52 }
 0x1e6   : > { %v1677_v19 = vmul.f32 0.25, %v1630_v9 }
 0x1e7   : > { %v1743_v21 = vsel %vm913_vm6, %v1715_v18, 0.0  ;;  %v1716_v22 = vmul.f32 %v3196_v56, %v3196_v56 }
 0x1e8   : > { %v3204_v23 = vsub.f32 %v3111_v62, %v1677_v19  ;;  %1744 = vadd.xlane.f32.xlu0 %v1743_v21 }
 0x1e9   : > { %v1633_v44 = vpop.xlane.xlu0 %1632  ;;  %v1746_v20 = vsel %vm913_vm6, %v1716_v22, 0.0 }
 0x1ea   : > { %v1678_v14 = vmul.f32 0.25, %v1633_v44  ;;  %1747 = vadd.xlane.f32.xlu1 %v1746_v20  ;;  %v1709_v26 = vmul.f32 %v3204_v23, %v3204_v23 }
 0x1ec   : > { %v3210_v25 = vsub.f32 %v3118_v15, %v1678_v14  ;;  %v1725_v28 = vsel %vm913_vm6, %v1709_v26, 0.0 }
 0x1ed   : > { %v1636_v32 = vpop.xlane.xlu1 %1635  ;;  %v1654_v33 = vpop.xlane.xlu0 %1653  ;;  %1726 = vadd.xlane.f32.xlu0 %v1725_v28 }
 0x1ee   : > { %v1679_v24 = vmul.f32 0.25, %v1636_v32  ;;  %v1685_v62 = vmul.f32 0.25, %v1654_v33  ;;  %v1710_v37 = vmul.f32 %v3210_v25, %v3210_v25 }
 0x1f0   : > { %v3216_v13 = vsub.f32 %v3129_v16, %v1679_v24  ;;  %v3219_v58 = vsub.f32 %v3125_v55, %v1685_v62  ;;  %v1728_v40 = vsel %vm913_vm6, %v1710_v37, 0.0 }
 0x1f1   : > { %v1657_v15 = vpop.xlane.xlu1 %1656  ;;  %v1660_v49 = vpop.xlane.xlu0 %1659  ;;  %1729 = vadd.xlane.f32.xlu1 %v1728_v40 }
 0x1f2   : > { %v1686_v43 = vmul.f32 0.25, %v1657_v15  ;;  %v1687_v63 = vmul.f32 0.25, %v1660_v49  ;;  %v1717_v10 = vmul.f32 %v3219_v58, %v3219_v58  ;;  %v1711_v55 = vmul.f32 %v3216_v13, %v3216_v13 }
 0x1f4   : > { %v3225_v12 = vsub.f32 %v3137_v29, %v1686_v43  ;;  %v3228_v38 = vsub.f32 %v3141_v17, %v1687_v63  ;;  %v1749_v16 = vsel %vm913_vm6, %v1717_v10, 0.0  ;;  %v1731_v17 = vsel %vm913_vm6, %v1711_v55, 0.0  ;;  %v3279_v63 = vld [vmem:[%s3405_s4] ss:$0 sm:$0xff] }
 0x1f5   : > { %v1639_v45 = vpop.xlane.xlu1 %1638  ;;  %1750 = vadd.xlane.f32.xlu0 %v1749_v16 }
 0x1f6   : > { %v1680_v31 = vmul.f32 0.25, %v1639_v45  ;;  %v1718_v36 = vmul.f32 %v3225_v12, %v3225_v12  ;;  %v1719_v27 = vmul.f32 %v3228_v38, %v3228_v38  ;;  %v3285_v45 = vld [vmem:[%s3406_s5] ss:$0 sm:$0xff] }
 0x1f8   : > { %v3236_v4 = vsub.f32 %v3149_v61, %v1680_v31  ;;  %v1752_v29 = vsel %vm913_vm6, %v1718_v36, 0.0  ;;  %v1666_v5 = vpop.xlane.xlu0 %1665  ;;  %v1755_v35 = vsel %vm913_vm6, %v1719_v27, 0.0 }
 0x1f9   : > { %v1663_v34 = vpop.xlane.xlu1 %1662  ;;  %1753 = vadd.xlane.f32.xlu1 %v1752_v29  ;;  %v1689_v50 = vmul.f32 0.25, %v1666_v5  ;;  %1732 = vadd.xlane.f32.xlu0 %v1731_v17 }
 0x1fa   : > { %v1688_v41 = vmul.f32 0.25, %v1663_v34  ;;  %v1712_v53 = vmul.f32 %v3236_v4, %v3236_v4 }
 0x1fb   : > { %v3245_v3 = vsub.f32 %v3159_v11, %v1689_v50 }
 0x1fc   : > { %v3248_v61 = vsub.f32 %v3156_v0, %v1688_v41  ;;  %v1734_v6 = vsel %vm913_vm6, %v1712_v53, 0.0 }
 0x1fd   : > { %1735 = vadd.xlane.f32.xlu1 %v1734_v6  ;;  %v1669_v42 = vpop.xlane.xlu1 %1668  ;;  %1756 = vadd.xlane.f32.xlu0 %v1755_v35  ;;  %v1672_v47 = vpop.xlane.xlu0 %1671  ;;  %v1721_v2 = vmul.f32 %v3245_v3, %v3245_v3 }
 0x1fe   : > { %v1690_v48 = vmul.f32 0.25, %v1669_v42  ;;  %v1691_v51 = vmul.f32 0.25, %v1672_v47  ;;  %v1720_v11 = vmul.f32 %v3248_v61, %v3248_v61 }
 0x1ff   : > { %v1761_v54 = vsel %vm913_vm6, %v1721_v2, 0.0 }
 0x200   : > { %v3258_v0 = vsub.f32 %v3164_v30, %v1690_v48  ;;  %v3261_v57 = vsub.f32 %v3171_v39, %v1691_v51  ;;  %v1758_v60 = vsel %vm913_vm6, %v1720_v11, 0.0 }
 0x201   : > { %1759 = vadd.xlane.f32.xlu1 %v1758_v60  ;;  %v1675_v1 = vpop.xlane.xlu1 %1674  ;;  %1762 = vadd.xlane.f32.xlu0 %v1761_v54 }
 0x202   : > { %v1692_v7 = vmul.f32 0.25, %v1675_v1  ;;  %v1722_v9 = vmul.f32 %v3258_v0, %v3258_v0  ;;  %v1723_v18 = vmul.f32 %v3261_v57, %v3261_v57 }
 0x204   : > { %v3269_v19 = vsub.f32 %v3176_v59, %v1692_v7  ;;  %v1764_v30 = vsel %vm913_vm6, %v1722_v9, 0.0  ;;  %v1767_v39 = vsel %vm913_vm6, %v1723_v18, 0.0 }
 0x205   : > { %1765 = vadd.xlane.f32.xlu1 %v1764_v30  ;;  %1768 = vadd.xlane.f32.xlu0 %v1767_v39 }
 0x206   : > { %v1724_v21 = vmul.f32 %v3269_v19, %v3269_v19 }
 0x208   : > { %v1770_v22 = vsel %vm913_vm6, %v1724_v21, 0.0 }
 0x209   : > { %1771 = vadd.xlane.f32.xlu1 %v1770_v22 }
 0x26d   : > { %v1739_v44 = vpop.xlane.xlu0 %1738 }
 0x26e   : > { %v1777_v20 = vmul.f32 0.25, %v1739_v44 }
 0x26f   : > { %v1742_v14 = vpop.xlane.xlu1 %1741 }
 0x270   : > { %v1793_v26 = vadd.f32 1e-05, %v1777_v20  ;;  %v1778_v28 = vmul.f32 0.25, %v1742_v14 }
 0x272   : > { %2527 = vrsqrt.f32 %v1793_v26  ;;  %v1794_v59 = vadd.f32 1e-05, %v1778_v28 }
 0x274   : > { %2529 = vrsqrt.f32 %v1794_v59 }
 0x275   : > { %v1745_v32 = vpop.xlane.xlu0 %1744 }
 0x276   : > { %v1779_v33 = vmul.f32 0.25, %v1745_v32 }
 0x277   : > { %v1748_v24 = vpop.xlane.xlu1 %1747 }
 0x278   : > { %v1795_v62 = vadd.f32 1e-05, %v1779_v33  ;;  %v1780_v37 = vmul.f32 0.25, %v1748_v24 }
 0x27a   : > { %2531 = vrsqrt.f32 %v1795_v62  ;;  %v1796_v40 = vadd.f32 1e-05, %v1780_v37  ;;  %v1727_v15 = vpop.xlane.xlu0 %1726 }
 0x27b   : > { %v1773_v49 = vmul.f32 0.25, %v1727_v15 }
 0x27c   : > { %v2528_v43 = vpop.eup %2527  ;;  %2533 = vrsqrt.f32 %v1796_v40 }
 0x27d   : > { %v1825_v10 = vmul.f32 %v2528_v43, %v3181_v46  ;;  %v1789_v16 = vadd.f32 1e-05, %v1773_v49 }
 0x27e   : > { %v2530_v55 = vpop.eup %2529  ;;  %v1730_v31 = vpop.xlane.xlu1 %1729 }
 0x27f   : > { %v1848_v36 = vmul.f32 %v3279_v63, %v1825_v10  ;;  %v1826_v29 = vmul.f32 %v2530_v55, %v3184_v8  ;;  %2535 = vrsqrt.f32 %v1789_v16  ;;  %v1774_v5 = vmul.f32 0.25, %v1730_v31 }
 0x281   : > { %v1871_v17 = vadd.f32 %v3285_v45, %v1848_v36  ;;  %v1849_v27 = vmul.f32 %v3279_v63, %v1826_v29  ;;  %v1790_v34 = vadd.f32 1e-05, %v1774_v5 }
 0x282   : > { %v1751_v46 = vpop.xlane.xlu0 %1750 }
 0x283   : > { %v1903_v50 = vmul.f32 0.70710677, %v1871_v17  ;;  %v1872_v41 = vadd.f32 %v3285_v45, %v1849_v27  ;;  %2537 = vrsqrt.f32 %v1790_v34  ;;  %v1781_v6 = vmul.f32 0.25, %v1751_v46 }
 0x284   : > { %v2532_v53 = vpop.eup %2531  ;;  %v1887_v49 = vmul.f32 0.5, %v1871_v17 }
 0x285   : > { %2539 = verf.f32 %v1903_v50  ;;  %v1904_v35 = vmul.f32 0.70710677, %v1872_v41  ;;  %v1827_v42 = vmul.f32 %v2532_v53, %v3193_v52  ;;  %v1797_v8 = vadd.f32 1e-05, %v1781_v6 }
 0x286   : > { %v2534_v47 = vpop.eup %2533  ;;  %v1754_v2 = vpop.xlane.xlu1 %1753  ;;  %v1888_v31 = vmul.f32 0.5, %v1872_v41 }
 0x287   : > { %v1733_v48 = vpop.xlane.xlu0 %1732  ;;  %2541 = verf.f32 %v1904_v35  ;;  %v1850_v51 = vmul.f32 %v3279_v63, %v1827_v42  ;;  %v1828_v11 = vmul.f32 %v2534_v47, %v3196_v56  ;;  %v1782_v54 = vmul.f32 0.25, %v1754_v2 }
 0x288   : > { %2543 = vrsqrt.f32 %v1797_v8  ;;  %v1775_v60 = vmul.f32 0.25, %v1733_v48 }
 0x289   : > { %v2536_v1 = vpop.eup %2535  ;;  %v3296_v7 = vadd.f32 %v3285_v45, %v1850_v51  ;;  %v1851_v9 = vmul.f32 %v3279_v63, %v1828_v11  ;;  %v1798_v18 = vadd.f32 1e-05, %v1782_v54 }
 0x28a   : > { %v1821_v52 = vmul.f32 %v2536_v1, %v3204_v23  ;;  %v1791_v30 = vadd.f32 1e-05, %v1775_v60  ;;  %v1736_v39 = vpop.xlane.xlu1 %1735 }
 0x28b   : > { %v1757_v21 = vpop.xlane.xlu0 %1756  ;;  %v1905_v22 = vmul.f32 0.70710677, %v3296_v7  ;;  %v3302_v44 = vadd.f32 %v3285_v45, %v1851_v9  ;;  %2545 = vrsqrt.f32 %v1798_v18  ;;  %v1776_v20 = vmul.f32 0.25, %v1736_v39 }
 0x28c   : > { %v1844_v56 = vmul.f32 %v3279_v63, %v1821_v52  ;;  %2547 = vrsqrt.f32 %v1791_v30  ;;  %v1783_v14 = vmul.f32 0.25, %v1757_v21  ;;  %v1889_v1 = vmul.f32 0.5, %v3296_v7 }
 0x28d   : > { %v2538_v26 = vpop.eup %2537  ;;  %2549 = verf.f32 %v1905_v22  ;;  %v1906_v28 = vmul.f32 0.70710677, %v3302_v44  ;;  %v1792_v32 = vadd.f32 1e-05, %v1776_v20 }
 0x28e   : > { %v3307_v23 = vadd.f32 %v3285_v45, %v1844_v56  ;;  %v1822_v59 = vmul.f32 %v2538_v26, %v3210_v25  ;;  %v1760_v33 = vpop.xlane.xlu1 %1759  ;;  %v1799_v37 = vadd.f32 1e-05, %v1783_v14  ;;  %v1890_v56 = vmul.f32 0.5, %v3302_v44 }
 0x28f   : > { %v1763_v24 = vpop.xlane.xlu0 %1762  ;;  %v2540_v62 = vpop.eup %2539  ;;  %2551 = verf.f32 %v1906_v28  ;;  %v1784_v40 = vmul.f32 0.25, %v1760_v33 }
 0x290   : > { %v1785_v15 = vmul.f32 0.25, %v1763_v24  ;;  %v1935_v43 = vadd.f32 1.0, %v2540_v62  ;;  %v1899_v10 = vmul.f32 0.70710677, %v3307_v23  ;;  %v1845_v16 = vmul.f32 %v3279_v63, %v1822_v59 }
 0x291   : > { %v2542_v55 = vpop.eup %2541  ;;  %2553 = vrsqrt.f32 %v1792_v32  ;;  %v1800_v36 = vadd.f32 1e-05, %v1784_v40 }
 0x292   : > { %v1801_v25 = vadd.f32 1e-05, %v1785_v15  ;;  %v2544_v29 = vpop.eup %2543  ;;  %v1951_v5 = vmul.f32 %v1935_v43, %v1887_v49  ;;  %v1936_v27 = vadd.f32 1.0, %v2542_v55  ;;  %2555 = verf.f32 %v1899_v10  ;;  %v1766_v46 = vpop.xlane.xlu1 %1765 }
 0x293   : > { %v3314_v34 = vadd.f32 %v3285_v45, %v1845_v16  ;;  %v1769_v50 = vpop.xlane.xlu0 %1768  ;;  %v1829_v17 = vmul.f32 %v2544_v29, %v3219_v58  ;;  %2557 = vrsqrt.f32 %v1799_v37  ;;  %v1786_v41 = vmul.f32 0.25, %v1766_v46 }
 0x294   : > { %v1787_v53 = vmul.f32 0.25, %v1769_v50  ;;  %v2299_v6 = vpack.c.bf16 %v1951_v5, %v1951_v5  ;;  %v1952_v35 = vmul.f32 %v1936_v27, %v1888_v31  ;;  %2559 = vrsqrt.f32 %v1800_v36 }
 0x295   : > { %v1900_v42 = vmul.f32 0.70710677, %v3314_v34  ;;  %v2546_v47 = vpop.eup %2545  ;;  %v1852_v8 = vmul.f32 %v3279_v63, %v1829_v17  ;;  %v1802_v2 = vadd.f32 1e-05, %v1786_v41  ;;  %v1883_v37 = vmul.f32 0.5, %v3307_v23 }
 0x296   : > { %v1803_v48 = vadd.f32 1e-05, %v1787_v53  ;;  %v2548_v51 = vpop.eup %2547  ;;  %2032 = vst.msk [vmem:[%s3319_s9 + $0x10] sm:$0xf] %vm2027_vm7, %v2299_v6  ;;  %v2300_v11 = vpack.c.bf16 %v1952_v35, %v1952_v35  ;;  %v1830_v58 = vmul.f32 %v2546_v47, %v3225_v12  ;;  %v1772_v54 = vpop.xlane.xlu1 %1771  ;;  %v1884_v29 = vmul.f32 0.5, %v3314_v34 }
 0x297   : > { %2561 = verf.f32 %v1900_v42  ;;  %v2550_v60 = vpop.eup %2549  ;;  %v3329_v9 = vadd.f32 %v3285_v45, %v1852_v8  ;;  %v1823_v18 = vmul.f32 %v2548_v51, %v3216_v13  ;;  %v1788_v39 = vmul.f32 0.25, %v1772_v54 }
 0x298   : > { %2563 = vrsqrt.f32 %v1801_v25  ;;  %2033 = vst.msk [vmem:[%s3319_s9 + $0x14] sm:$0xf] %vm2027_vm7, %v2300_v11  ;;  %v1937_v52 = vadd.f32 1.0, %v2550_v60  ;;  %v1853_v30 = vmul.f32 %v3279_v63, %v1830_v58 }
 0x299   : > { %2565 = vrsqrt.f32 %v1802_v2  ;;  %v2552_v21 = vpop.eup %2551  ;;  %v1907_v12 = vmul.f32 0.70710677, %v3329_v9  ;;  %v1846_v22 = vmul.f32 %v3279_v63, %v1823_v18  ;;  %v1804_v24 = vadd.f32 1e-05, %v1788_v39 }
 0x29a   : > { %2567 = vrsqrt.f32 %v1803_v48  ;;  %v1953_v7 = vmul.f32 %v1937_v52, %v1889_v1  ;;  %v1938_v20 = vadd.f32 1.0, %v2552_v21  ;;  %v1876_v13 = vadd.f32 %v3285_v45, %v1853_v30 }
 0x29b   : > { %v2554_v14 = vpop.eup %2553  ;;  %2569 = verf.f32 %v1907_v12  ;;  %v1869_v26 = vadd.f32 %v3285_v45, %v1846_v22  ;;  %v1891_v48 = vmul.f32 0.5, %v3329_v9 }
 0x29c   : > { %v2556_v28 = vpop.eup %2555  ;;  %v2301_v59 = vpack.c.bf16 %v1953_v7, %v1953_v7  ;;  %v1954_v32 = vmul.f32 %v1938_v20, %v1890_v56  ;;  %v1908_v33 = vmul.f32 0.70710677, %v1876_v13  ;;  %v1824_v44 = vmul.f32 %v2554_v14, %v3236_v4 }
 0x29d   : > { %v2558_v62 = vpop.eup %2557  ;;  %v1931_v40 = vadd.f32 1.0, %v2556_v28  ;;  %v1901_v15 = vmul.f32 0.70710677, %v1869_v26  ;;  %v1892_v52 = vmul.f32 0.5, %v1876_v13  ;;  %v1885_v30 = vmul.f32 0.5, %v1869_v26 }
 0x29e   : > { %2034 = vst.msk [vmem:[%s3319_s9 + $0x18] sm:$0xf] %vm2027_vm7, %v2301_v59  ;;  %v2302_v49 = vpack.c.bf16 %v1954_v32, %v1954_v32  ;;  %2571 = verf.f32 %v1908_v33  ;;  %v1831_v43 = vmul.f32 %v2558_v62, %v3228_v38  ;;  %v2560_v10 = vpop.eup %2559  ;;  %v1847_v55 = vmul.f32 %v3279_v63, %v1824_v44 }
 0x29f   : > { %v1947_v16 = vmul.f32 %v1931_v40, %v1883_v37  ;;  %2573 = verf.f32 %v1901_v15  ;;  %v1832_v36 = vmul.f32 %v2560_v10, %v3248_v61 }
 0x2a0   : > { %2035 = vst.msk [vmem:[%s3319_s9 + $0x1c] sm:$0xf] %vm2027_vm7, %v2302_v49  ;;  %v1854_v23 = vmul.f32 %v3279_v63, %v1831_v43  ;;  %2575 = vrsqrt.f32 %v1804_v24  ;;  %v1870_v38 = vadd.f32 %v3285_v45, %v1847_v55 }
 0x2a1   : > { %v2562_v31 = vpop.eup %2561  ;;  %v2295_v25 = vpack.c.bf16 %v1947_v16, %v1947_v16  ;;  %v1855_v50 = vmul.f32 %v3279_v63, %v1832_v36 }
 0x2a2   : > { %v2564_v4 = vpop.eup %2563  ;;  %v1932_v5 = vadd.f32 1.0, %v2562_v31  ;;  %v1877_v46 = vadd.f32 %v3285_v45, %v1854_v23  ;;  %v1902_v53 = vmul.f32 0.70710677, %v1870_v38  ;;  %v1886_v62 = vmul.f32 0.5, %v1870_v38 }
 0x2a3   : > { %v2566_v27 = vpop.eup %2565  ;;  %v1833_v17 = vmul.f32 %v2564_v4, %v3245_v3  ;;  %2028 = vst.msk [vmem:[%s3319_s9] sm:$0xf] %vm2027_vm7, %v2295_v25  ;;  %v1878_v34 = vadd.f32 %v3285_v45, %v1855_v50 }
 0x2a4   : > { %v2568_v41 = vpop.eup %2567  ;;  %v1948_v61 = vmul.f32 %v1932_v5, %v1884_v29  ;;  %v1834_v6 = vmul.f32 %v2566_v27, %v3258_v0  ;;  %v1909_v35 = vmul.f32 0.70710677, %v1877_v46  ;;  %2577 = verf.f32 %v1902_v53 }
 0x2a5   : > { %v1856_v42 = vmul.f32 %v3279_v63, %v1833_v17  ;;  %v2570_v47 = vpop.eup %2569  ;;  %v1835_v3 = vmul.f32 %v2568_v41, %v3261_v57  ;;  %v1910_v11 = vmul.f32 0.70710677, %v1878_v34  ;;  %v1893_v37 = vmul.f32 0.5, %v1877_v46 }
 0x2a6   : > { %v2296_v8 = vpack.c.bf16 %v1948_v61, %v1948_v61  ;;  %v1857_v2 = vmul.f32 %v3279_v63, %v1834_v6  ;;  %v1939_v51 = vadd.f32 1.0, %v2570_v47  ;;  %2579 = verf.f32 %v1909_v35 }
 0x2a7   : > { %v1879_v0 = vadd.f32 %v3285_v45, %v1856_v42  ;;  %v1858_v54 = vmul.f32 %v3279_v63, %v1835_v3  ;;  %2581 = verf.f32 %v1910_v11  ;;  %v1894_v43 = vmul.f32 0.5, %v1878_v34 }
 0x2a8   : > { %2029 = vst.msk [vmem:[%s3319_s9 + $0x4] sm:$0xf] %vm2027_vm7, %v2296_v8  ;;  %v1880_v58 = vadd.f32 %v3285_v45, %v1857_v2  ;;  %v2572_v60 = vpop.eup %2571  ;;  %v1955_v1 = vmul.f32 %v1939_v51, %v1891_v48 }
 0x2a9   : > { %v2574_v18 = vpop.eup %2573  ;;  %v1940_v57 = vadd.f32 1.0, %v2572_v60  ;;  %v1911_v9 = vmul.f32 0.70710677, %v1879_v0  ;;  %v1881_v7 = vadd.f32 %v3285_v45, %v1858_v54  ;;  %v1895_v36 = vmul.f32 0.5, %v1879_v0 }
 0x2aa   : > { %v2576_v39 = vpop.eup %2575  ;;  %v2303_v21 = vpack.c.bf16 %v1955_v1, %v1955_v1  ;;  %v1933_v12 = vadd.f32 1.0, %v2574_v18  ;;  %v1912_v22 = vmul.f32 0.70710677, %v1880_v58  ;;  %v1896_v29 = vmul.f32 0.5, %v1880_v58 }
 0x2ab   : > { %v1956_v56 = vmul.f32 %v1940_v57, %v1892_v52  ;;  %2583 = verf.f32 %v1911_v9  ;;  %v1836_v20 = vmul.f32 %v2576_v39, %v3269_v19  ;;  %v1913_v13 = vmul.f32 0.70710677, %v1881_v7 }
 0x2ac   : > { %2036 = vst.msk [vmem:[%s3319_s9 + $0x20] sm:$0xf] %vm2027_vm7, %v2303_v21  ;;  %v1949_v14 = vmul.f32 %v1933_v12, %v1885_v30  ;;  %2585 = verf.f32 %v1912_v22  ;;  %v1897_v50 = vmul.f32 0.5, %v1881_v7 }
 0x2ad   : > { %v2304_v28 = vpack.c.bf16 %v1956_v56, %v1956_v56  ;;  %v1859_v26 = vmul.f32 %v3279_v63, %v1836_v20  ;;  %2587 = verf.f32 %v1913_v13 }
 0x2ae   : > { %v2297_v59 = vpack.c.bf16 %v1949_v14, %v1949_v14  ;;  %v2578_v32 = vpop.eup %2577 }
 0x2af   : > { %2037 = vst.msk [vmem:[%s3319_s9 + $0x24] sm:$0xf] %vm2027_vm7, %v2304_v28  ;;  %v1882_v33 = vadd.f32 %v3285_v45, %v1859_v26  ;;  %v1934_v19 = vadd.f32 1.0, %v2578_v32 }
 0x2b0   : > { %v2580_v24 = vpop.eup %2579  ;;  %2030 = vst.msk [vmem:[%s3319_s9 + $0x8] sm:$0xf] %vm2027_vm7, %v2297_v59 }
 0x2b1   : > { %v1941_v40 = vadd.f32 1.0, %v2580_v24  ;;  %v1914_v15 = vmul.f32 0.70710677, %v1882_v33  ;;  %v2582_v44 = vpop.eup %2581  ;;  %v1950_v49 = vmul.f32 %v1934_v19, %v1886_v62  ;;  %v1898_v34 = vmul.f32 0.5, %v1882_v33 }
 0x2b2   : > { %v1942_v10 = vadd.f32 1.0, %v2582_v44 }
 0x2b3   : > { %v1957_v63 = vmul.f32 %v1941_v40, %v1893_v37  ;;  %2589 = verf.f32 %v1914_v15  ;;  %v2298_v16 = vpack.c.bf16 %v1950_v49, %v1950_v49 }
 0x2b4   : > { %v1958_v31 = vmul.f32 %v1942_v10, %v1894_v43 }
 0x2b5   : > { %v2584_v55 = vpop.eup %2583  ;;  %v2305_v45 = vpack.c.bf16 %v1957_v63, %v1957_v63  ;;  %2031 = vst.msk [vmem:[%s3319_s9 + $0xc] sm:$0xf] %vm2027_vm7, %v2298_v16 }
 0x2b6   : > { %v2586_v23 = vpop.eup %2585  ;;  %v1943_v4 = vadd.f32 1.0, %v2584_v55  ;;  %v2306_v25 = vpack.c.bf16 %v1958_v31, %v1958_v31 }
 0x2b7   : > { %2038 = vst.msk [vmem:[%s3319_s9 + $0x28] sm:$0xf] %vm2027_vm7, %v2305_v45  ;;  %v1944_v5 = vadd.f32 1.0, %v2586_v23  ;;  %v2588_v38 = vpop.eup %2587 }
 0x2b8   : > { %v1959_v27 = vmul.f32 %v1943_v4, %v1895_v36  ;;  %2039 = vst.msk [vmem:[%s3319_s9 + $0x2c] sm:$0xf] %vm2027_vm7, %v2306_v25  ;;  %v1945_v17 = vadd.f32 1.0, %v2588_v38 }
 0x2b9   : > { %v1960_v46 = vmul.f32 %v1944_v5, %v1896_v29 }
 0x2ba   : > { %v2307_v41 = vpack.c.bf16 %v1959_v27, %v1959_v27  ;;  %v1961_v53 = vmul.f32 %v1945_v17, %v1897_v50 }
 0x2bb   : > { %v2308_v61 = vpack.c.bf16 %v1960_v46, %v1960_v46 }
 0x2bc   : > { %2040 = vst.msk [vmem:[%s3319_s9 + $0x30] sm:$0xf] %vm2027_vm7, %v2307_v41  ;;  %v2309_v35 = vpack.c.bf16 %v1961_v53, %v1961_v53 }
 0x2bd   : > { %v2590_v6 = vpop.eup %2589  ;;  %2041 = vst.msk [vmem:[%s3319_s9 + $0x34] sm:$0xf] %vm2027_vm7, %v2308_v61 }
 0x2be   : > { %v1946_v42 = vadd.f32 1.0, %v2590_v6  ;;  %2042 = vst.msk [vmem:[%s3319_s9 + $0x38] sm:$0xf] %vm2027_vm7, %v2309_v35 }
 0x2c0   : > { %v1962_v47 = vmul.f32 %v1946_v42, %v1898_v34 }
 0x2c2   : > { %v2310_v8 = vpack.c.bf16 %v1962_v47, %v1962_v47 }
 0x2c4   : > { %2043 = vst.msk [vmem:[%s3319_s9 + $0x3c] sm:$0xf] %vm2027_vm7, %v2310_v8 }
 0x2c5 PF: > { %s16_s23 = sadd.s32 1, %s2613_s23   ;;  %s3410_s21 = smov %s2609_s22 }
 0x2c6   : > { %p13_p5 = scmp.ge.s32.totalorder %s16_s23, 4   ;;  %s3411_s22 = smov %s3413_s24 }
 0x2c8   :  { %15 = sbr.rel (!%p13_p5) target bundleno = 2 (0x2), region = 81 }

// kernel: downsample_v2_forward.3
= control target key start
LH: loop header
LB: loop body
LE: loop exit
PB: predicated region body
PF: predicated region fallthrough
CT: control target
= control target key end

     0   :  { %s1669_s21 = smov 0   ;;  %s1671_s22 = smov 0   ;;  %s2001_s0 = inlined_call_operand.vmem [shape: bf16[2,5,17,16], index: 0, kind: input, shape index: {}, may-alias: {0,1}]   ;;  %s2002_s1 = inlined_call_operand.vmem [shape: bf16[2,5,17,16], index: 1, kind: input, shape index: {}, may-alias: {0,1}]   ;;  %s2003_s2 = inlined_call_operand.vmem [shape: bf16[4,16,8], index: 2, kind: input, shape index: {}]   ;;  %s2004_s3 = inlined_call_operand.vmem [shape: f32[1,8], index: 3, kind: input, shape index: {}]   ;;  %s2005_s4 = inlined_call_operand.vmem [shape: f32[1,8], index: 4, kind: input, shape index: {}]   ;;  %s2006_s5 = inlined_call_operand.vmem [shape: f32[1,8], index: 5, kind: input, shape index: {}]   ;;  %s2007_s6 = inlined_call_operand.vmem [shape: f32[2,4,16,8], index: 6, kind: output, shape index: {}]  }
   0x1   :  { %s1673_s23 = smov 0  }
   0x2 LB: > { %s28_s24 = sadd.s32 1, %s1626_s22  ;;  %p1388_p0 = scmp.ge.s32.totalorder %s1630_s23, 1  ;;  %s1630_s23 = sphi %s1673_s23, %s16_s23   ;;  %s1626_s22 = sphi %s1671_s22, %s2011_s22   ;;  %s1622_s21 = sphi %s1669_s21, %s2010_s21  }
   0x3   : > { %p30_p1 = scmp.ge.s32.totalorder %s28_s24, 2  ;;  %p268_p2 = scmp.lt.s32.totalorder %s1630_s23, 3 }
   0x5   : > { %s2013_s24 = smov (%p30_p1, %s28_s24), 0  ;;  %p269_p3 = pnand %p1388_p0, %p268_p2 }
   0x6   : > { %v1577_v0 = vld [vmem:[%s2003_s2 + $0x18] sm:$0xff] (!%p269_p3)   ;;  %v1632_v1 = vmov (!%p269_p3), 0.0   ;;  %v1578_v2 = vld [vmem:[%s2003_s2 + $0x8] sm:$0xff] (!%p269_p3)   ;;  %vm1633_vm0 = vmmov (!%p269_p3), 0   ;;  %p330_p4 = scmp.lt.s32.totalorder (!%p269_p3), %s1622_s21, 1  ;;  %v1702_v3 = vld [vmem:[%s2003_s2] sm:$0xff] (!%p269_p3)  }
   0x7   : > { %272 = sbr.rel (%p269_p3) target bundleno = 626 (0x272), region = 44  ;;  %1500 = vmatprep.subr.bf16.mxu1 (!%p269_p3), %v1632_v1  ;;  %1502 = vmatprep.mubr.msk.bf16.mxu1 (!%p269_p3), %vm1633_vm0, %v1632_v1  ;;  %vm382_vm1 = vsmask.f32 (!%p269_p3), 3328  ;;  %vm383_vm2 = vsmask.f32 (!%p269_p3), 7440  ;;  %vm504_vm3 = vcmask (!%p269_p3), 130048  }
   0x8   : > { %1501 = vmatpush3.bf16.msra.mxu1 (!%p269_p3), %v1577_v0  ;;  %1480 = vmatprep.subr.bf16.mxu0 (!%p269_p3), %v1578_v2  ;;  %vm1743_vm4 = vmor (!%p269_p3), %vm382_vm1, %vm383_vm2  ;;  %vm985_vm5 = vsmask.f32 (!%p269_p3), 7424  ;;  %vm685_vm6 = vcmask (!%p269_p3), 64512  }
   0x9   : > { %1514 = vmatprep.subr.bf16.mxu1 (!%p269_p3), %v1632_v1  ;;  %1481 = vmatpush3.bf16.msra.mxu0 (!%p269_p3), %v1578_v2  ;;  %v1579_v2 = vld [vmem:[%s2003_s2 + $0x10] sm:$0xff] (!%p269_p3)  }
   0xa   : > { %1490 = vmatprep.subr.bf16.mxu0 (!%p269_p3), %v1702_v3 }
   0xe   : > { %s2015_s21 = smov (!%p330_p4, %s1622_s21), 1 }
   0xf   : > { %s1548_s7 = smul.u32 60, %s2015_s21  ;;  %s1457_s29 = sshll.u32 %s2015_s21, 6 }
  0x11   : > { %s1711_s10 = scalar_lea.vmem %s2001_s0, %s1548_s7  ;;  %s1456_s11 = sadd.s32 48, %s1548_s7 }
  0x12   : > { %v1714_v4 = vld [vmem:[%s1711_s10] sm:$0xf]  ;;  %v1717_v5 = vld [vmem:[%s1711_s10 + $0x4] sm:$0xf]  ;;  %v378_v6 = vld [vmem:[%s1711_s10 + $0x8] sm:$0x1]  ;;  %s1785_s16 = scalar_lea.vmem %s2002_s1, %s1456_s11 }
  0x13   : > { %v386_v7 = vshrl.u32 %v1714_v4, 16  ;;  %v389_v8 = vshll.u32 %v1714_v4, 16  ;;  %v395_v9 = vshll.u32 %v1717_v5, 16  ;;  %v399_v10 = vshrl.u32 %v1717_v5, 16  ;;  %v1725_v11 = vld [vmem:[%s1711_s10 + $0xc] sm:$0xf] }
  0x14   : > { %v405_v12 = vshll.u32 %v378_v6, 16  ;;  %v1728_v13 = vld [vmem:[%s1711_s10 + $0x10] sm:$0xf]  ;;  %v1419_v14 = vld [vmem:[%s1711_s10 + $0x14] sm:$0x1]  ;;  %v705_v15 = vshrl.u32 %v1725_v11, 16 }
  0x15   : > { %v388_v16 = vrot.slane %v386_v7, 4  ;;  %v391_v17 = vrot.slane %v389_v8, 5  ;;  %v397_v18 = vrot.slane %v395_v9, 5  ;;  %v401_v19 = vrot.slane %v399_v10, 4  ;;  %v1733_v20 = vld [vmem:[%s1711_s10 + $0xc] sm:$0xf] }
  0x16   : > { %v407_v21 = vrot.slane %v405_v12, 5  ;;  %v707_v22 = vrot.slane %v705_v15, 4  ;;  %v708_v23 = vshll.u32 %v1725_v11, 16  ;;  %v714_v24 = vshll.u32 %v1728_v13, 16  ;;  %v1739_v29 = vld [vmem:[%s1711_s10 + $0x10] sm:$0xf] }
  0x17   : > { %v392_v25 = vor.u32 %v391_v17, %v388_v16  ;;  %v402_v26 = vor.u32 %v401_v19, %v397_v18  ;;  %v718_v27 = vshrl.u32 %v1728_v13, 16  ;;  %v724_v28 = vshll.u32 %v1419_v14, 16  ;;  %v379_v39 = vld [vmem:[%s1711_s10 + $0x14] sm:$0x1]  ;;  %v1752_v44 = vld [vmem:[%s1711_s10 + $0x18] sm:$0xf] }
  0x18   : > { %v710_v31 = vrot.slane %v708_v23, 5  ;;  %v716_v32 = vrot.slane %v714_v24, 5  ;;  %v410_v33 = vshrl.u32 %v1733_v20, 16  ;;  %v413_v34 = vshll.u32 %v1733_v20, 16  ;;  %v1760_v49 = vld [vmem:[%s1711_s10 + $0x1c] sm:$0xf] }
  0x19   : > { %v393_v35 = vrot.slane %v392_v25, 4  ;;  %v403_v36 = vrot.slane %v402_v26, 4  ;;  %v720_v37 = vrot.slane %v718_v27, 4  ;;  %v726_v38 = vrot.slane %v724_v28, 5  ;;  %v380_v57 = vld [vmem:[%s1711_s10 + $0x20] sm:$0x1] }
  0x1a   : > { %v711_v40 = vor.u32 %v710_v31, %v707_v22  ;;  %v412_v41 = vrot.slane %v410_v33, 4  ;;  %v415_v42 = vrot.slane %v413_v34, 5  ;;  %v419_v43 = vshll.u32 %v1739_v29, 16  ;;  %v1772_v63 = vld [vmem:[%s1711_s10 + $0x18] sm:$0xf] }
  0x1b   : > { %v398_v45 = vsel %vm1743_vm4, %v393_v35, %v397_v18  ;;  %v408_v46 = vsel %vm1743_vm4, %v403_v36, %v407_v21  ;;  %v721_v47 = vor.u32 %v720_v37, %v716_v32  ;;  %v423_v48 = vshrl.u32 %v1739_v29, 16  ;;  %v1780_v9 = vld [vmem:[%s1711_s10 + $0x1c] sm:$0xf]  ;;  %v1420_v16 = vld [vmem:[%s1711_s10 + $0x20] sm:$0x1] }
  0x1c   : > { %v1395_v50 = vcombine.low %v398_v45, %v408_v46  ;;  %v712_v51 = vrot.slane %v711_v40, 4  ;;  %v416_v52 = vor.u32 %v415_v42, %v412_v41  ;;  %v421_v53 = vrot.slane %v419_v43, 5  ;;  %v1797_v26 = vld [vmem:[%s1711_s10 + $0x24] sm:$0xf]  ;;  %v1804_v33 = vld [vmem:[%s1711_s10 + $0x28] sm:$0xf] }
  0x1d   : > { %v722_v54 = vrot.slane %v721_v47, 4  ;;  %v425_v55 = vrot.slane %v423_v48, 4  ;;  %v429_v56 = vshll.u32 %v379_v39, 16  ;;  %v434_v58 = vshrl.u32 %v1752_v44, 16  ;;  %v381_v45 = vld [vmem:[%s1711_s10 + $0x2c] sm:$0x1] }
  0x1e   : > { %1482 = vmatprep.mubr.msk.bf16.mxu0 %vm504_vm3, %v1395_v50  ;;  %v717_v59 = vsel %vm1743_vm4, %v712_v51, %v716_v32  ;;  %v417_v60 = vrot.slane %v416_v52, 4  ;;  %v437_v61 = vshll.u32 %v1752_v44, 16  ;;  %v443_v62 = vshll.u32 %v1760_v49, 16  ;;  %v1814_v48 = vld [vmem:[%s1711_s10 + $0x24] sm:$0xf] }
  0x1f   : > { %v727_v0 = vsel %vm1743_vm4, %v722_v54, %v726_v38  ;;  %v426_v6 = vor.u32 %v425_v55, %v421_v53  ;;  %v431_v7 = vrot.slane %v429_v56, 5  ;;  %v436_v8 = vrot.slane %v434_v58, 4 }
  0x20   : > { %v1426_v10 = vcombine.low %v717_v59, %v727_v0  ;;  %v422_v12 = vsel %vm1743_vm4, %v417_v60, %v421_v53  ;;  %v439_v14 = vrot.slane %v437_v61, 5  ;;  %v445_v15 = vrot.slane %v443_v62, 5  ;;  %v1822_v61 = vld [vmem:[%s1711_s10 + $0x28] sm:$0xf] }
  0x21   : > { %v427_v17 = vrot.slane %v426_v6, 4  ;;  %v447_v18 = vshrl.u32 %v1760_v49, 16  ;;  %v453_v19 = vshll.u32 %v380_v57, 16  ;;  %v729_v21 = vshrl.u32 %v1772_v63, 16 }
  0x22   : > { %1503 = vmatmul.mubr.msk.bf16.vlgmr.msra.gmra.mrb[0].mxu1 %vm504_vm3, %v1426_v10  ;;  %v440_v22 = vor.u32 %v439_v14, %v436_v8  ;;  %v732_v23 = vshll.u32 %v1772_v63, 16  ;;  %v738_v24 = vshll.u32 %v1780_v9, 16  ;;  %v742_v25 = vshrl.u32 %v1780_v9, 16 }
  0x23   : > { %1515 = vmatpush3.bf16.msra.mxu1 %v1579_v2  ;;  %v432_v27 = vsel %vm1743_vm4, %v427_v17, %v431_v7  ;;  %1506 = vmatprep.mubr.msk.bf16.mxu1 %vm1633_vm0, %v1632_v1  ;;  %v449_v28 = vrot.slane %v447_v18, 4  ;;  %v455_v31 = vrot.slane %v453_v19, 5  ;;  %v731_v32 = vrot.slane %v729_v21, 4  ;;  %v1421_v7 = vld [vmem:[%s1711_s10 + $0x2c] sm:$0x1]  ;;  %s1967_s10 = scalar_lea.vmem %s2007_s6, %s1457_s29 }
  0x24   : > { %v1396_v34 = vcombine.low %v422_v12, %v432_v27  ;;  %v441_v35 = vrot.slane %v440_v22, 4  ;;  %v734_v36 = vrot.slane %v732_v23, 5  ;;  %v740_v37 = vrot.slane %v738_v24, 5 }
  0x25   : > { %v450_v38 = vor.u32 %v449_v28, %v445_v15  ;;  %v744_v39 = vrot.slane %v742_v25, 4  ;;  %v748_v40 = vshll.u32 %v1420_v16, 16  ;;  %v458_v41 = vshrl.u32 %v1797_v26, 16 }
  0x26   : > { %1483 = vmatmul.mubr.msk.bf16.vlgmr.msra.gmra.mrb[0].mxu0 %vm504_vm3, %v1396_v34  ;;  %v446_v42 = vsel %vm1743_vm4, %v441_v35, %v445_v15  ;;  %v735_v43 = vor.u32 %v734_v36, %v731_v32  ;;  %v461_v46 = vshll.u32 %v1797_v26, 16  ;;  %v467_v47 = vshll.u32 %v1804_v33, 16 }
  0x27   : > { %1491 = vmatpush3.bf16.msra.mxu0 %v1702_v3  ;;  %v451_v50 = vrot.slane %v450_v38, 4  ;;  %v745_v51 = vor.u32 %v744_v39, %v740_v37  ;;  %v750_v52 = vrot.slane %v748_v40, 5  ;;  %v460_v53 = vrot.slane %v458_v41, 4 }
  0x28   : > { %v736_v54 = vrot.slane %v735_v43, 4  ;;  %v463_v55 = vrot.slane %v461_v46, 5  ;;  %v469_v56 = vrot.slane %v467_v47, 5  ;;  %v471_v57 = vshrl.u32 %v1804_v33, 16  ;;  %1528 = vmatprep.subr.bf16.mxu0 %v1632_v1  ;;  %v1588_v43 = vld [vmem:[%s1785_s16] sm:$0xff]  }
  0x29   : > { %v456_v58 = vsel %vm1743_vm4, %v451_v50, %v455_v31  ;;  %v746_v59 = vrot.slane %v745_v51, 4  ;;  %v477_v60 = vshll.u32 %v381_v45, 16  ;;  %v753_v3 = vshrl.u32 %v1814_v48, 16 }
  0x2a   : > { %v1397_v62 = vcombine.low %v446_v42, %v456_v58  ;;  %v741_v0 = vsel %vm1743_vm4, %v736_v54, %v740_v37  ;;  %v464_v2 = vor.u32 %v463_v55, %v460_v53  ;;  %v473_v6 = vrot.slane %v471_v57, 4 }
  0x2b   : > { %v751_v8 = vsel %vm1743_vm4, %v746_v59, %v750_v52  ;;  %v479_v10 = vrot.slane %v477_v60, 5  ;;  %v755_v12 = vrot.slane %v753_v3, 4  ;;  %v756_v14 = vshll.u32 %v1814_v48, 16 }
  0x2c   : > { %1486 = vmatprep.mubr.msk.bf16.mxu0 %vm504_vm3, %v1397_v62  ;;  %v1427_v15 = vcombine.low %v741_v0, %v751_v8  ;;  %v465_v16 = vrot.slane %v464_v2, 4  ;;  %v474_v17 = vor.u32 %v473_v6, %v469_v56  ;;  %v762_v18 = vshll.u32 %v1822_v61, 16 }
  0x2d   : > { %v758_v19 = vrot.slane %v756_v14, 5  ;;  %v766_v21 = vshrl.u32 %v1822_v61, 16  ;;  %v772_v22 = vshll.u32 %v1421_v7, 16  ;;  %v1404_v32 = vcombine.low %v1714_v4, %v1717_v5  ;;  %v1583_v5 = vld [vmem:[%s2003_s2 + $0x18] sm:$0xff]  }
  0x2e   : > { %1507 = vmatmul.mubr.msk.bf16.gmra.mrb[4].mxu1 %vm504_vm3, %v1427_v15  ;;  %v470_v23 = vsel %vm1743_vm4, %v465_v16, %v469_v56  ;;  %v475_v24 = vrot.slane %v474_v17, 4  ;;  %v764_v25 = vrot.slane %v762_v18, 5  ;;  %v1405_v4 = vcombine.low %v1733_v20, %v1739_v29  ;;  %v1589_v29 = vld [vmem:[%s1785_s16 + $0x8] ss:$0 sps:$4 sm:$0x11]  }
  0x2f   : > { %1510 = vmatprep.mubr.msk.bf16.mxu1 %vm1633_vm0, %v1632_v1  ;;  %v759_v27 = vor.u32 %v758_v19, %v755_v12  ;;  %v768_v28 = vrot.slane %v766_v21, 4  ;;  %v774_v37 = vrot.slane %v772_v22, 5  ;;  %v1406_v42 = vcombine.low %v1752_v44, %v1760_v49 }
  0x30   : > { %v480_v31 = vsel %vm1743_vm4, %v475_v24, %v479_v10  ;;  %v1433_v20 = vcombine.low %v1725_v11, %v1728_v13  ;;  %v989_v30 = vshll.u32 %v1588_v43, 16  ;;  %v1407_v45 = vcombine.low %v1797_v26, %v1804_v33  ;;  %v1590_v33 = vld [vmem:[%s2003_s2 + $0x10] sm:$0xff]  }
  0x31   : > { %v1398_v34 = vcombine.low %v470_v23, %v480_v31  ;;  %v760_v35 = vrot.slane %v759_v27, 4  ;;  %v769_v36 = vor.u32 %v768_v28, %v764_v25  ;;  %v987_v44 = vshrl.u32 %v1588_v43, 16 }
  0x32   : > { %v991_v49 = vrot.slane %v989_v30, 1  ;;  %v994_v46 = vshll.u32 %v1589_v29, 16  ;;  %v1434_v11 = vcombine.low %v1772_v63, %v1780_v9  ;;  %v1435_v63 = vcombine.low %v1814_v48, %v1822_v61 }
  0x33   : > { %1487 = vmatmul.mubr.msk.bf16.gmra.mrb[4].mxu0 %vm504_vm3, %v1398_v34  ;;  %v765_v38 = vsel %vm1743_vm4, %v760_v35, %v764_v25  ;;  %v770_v39 = vrot.slane %v769_v36, 4  ;;  %v1450_v36 = vld [vmem:[%s2004_s3] ss:$0 sm:$0xff] }
  0x34   : > { %1492 = vmatprep.mubr.msk.bf16.mxu0 %vm504_vm3, %v1404_v32  ;;  %v992_v13 = vor.u32 %v991_v49, %v987_v44  ;;  %v996_v47 = vrot.slane %v994_v46, 1 }
  0x35   : > { %v775_v40 = vsel %vm1743_vm4, %v770_v39, %v774_v37 }
  0x36   : > { %v1428_v41 = vcombine.low %v765_v38, %v775_v40  ;;  %v997_v26 = vsel %vm985_vm5, %v992_v13, %v996_v47 }
  0x38   : > { %1511 = vmatmul.mubr.msk.bf16.gmra.mrb[8].mxu1 %vm504_vm3, %v1428_v41 }
  0x39   : > { %1516 = vmatprep.mubr.msk.bf16.mxu1 %vm1633_vm0, %v1632_v1 }
  0x3b   : > { %1493 = vmatmul.mubr.msk.bf16.vlgmr.msra.gmra.mrb[0].mxu0 %vm504_vm3, %v1405_v4 }
  0x3c   : > { %1529 = vmatpush3.bf16.msra.mxu0 %v1583_v5  ;;  %1496 = vmatprep.mubr.msk.bf16.mxu0 %vm504_vm3, %v1406_v42 }
  0x3d   : > { %1534 = vmatprep.subr.bf16.mxu0 %v1632_v1 }
  0x40   : > { %1517 = vmatmul.mubr.msk.bf16.vlgmr.msra.gmra.mrb[12].mxu1 %vm504_vm3, %v1433_v20 }
  0x41   : > { %1520 = vmatprep.mubr.msk.bf16.mxu1 %vm1633_vm0, %v1632_v1 }
  0x43   : > { %1497 = vmatmul.mubr.msk.bf16.gmra.mrb[4].mxu0 %vm504_vm3, %v1407_v45 }
  0x44   : > { %1530 = vmatprep.mubr.msk.bf16.mxu0 %vm1633_vm0, %v1632_v1 }
  0x48   : > { %1521 = vmatmul.mubr.msk.bf16.gmra.mrb[16].mxu1 %vm504_vm3, %v1434_v11 }
  0x49   : > { %1524 = vmatprep.mubr.msk.bf16.mxu1 %vm1633_vm0, %v1632_v1 }
  0x4b   : > { %1531 = vmatmul.mubr.msk.bf16.vlgmr.msra.gmra.mrb[8].mxu0 %vm504_vm3, %v997_v26 }
  0x4c   : > { %1535 = vmatpush3.bf16.msra.mxu0 %v1590_v33  ;;  %1536 = vmatprep.mubr.msk.bf16.mxu0 %vm1633_vm0, %v1632_v1 }
  0x50   : > { %1525 = vmatmul.mubr.msk.bf16.gmra.mrb[20].mxu1 %vm504_vm3, %v1435_v63 }
  0x53   : > { %1537 = vmatmul.mubr.msk.bf16.vlgmr.msra.gmra.mrb[12].mxu0 %vm504_vm3, %v1588_v43 }
  0xf5   : > { %v846_v9 = vpop.f32.mrb[0].mxu1 }
  0xf6   : > { %v1504_v50 = vpop.f32.mrb[1].mxu1 }
  0xf7   : > { %v849_v51 = vpop.f32.mrb[2].mxu1 }
  0xf8   : > { %v1505_v52 = vpop.f32.mrb[3].mxu1 }
 0x101   : > { %v854_v53 = vpop.f32.mrb[4].mxu1 }
 0x102   : > { %v1508_v54 = vpop.f32.mrb[5].mxu1 }
 0x103   : > { %v857_v55 = vpop.f32.mrb[6].mxu1 }
 0x104   : > { %v1509_v56 = vpop.f32.mrb[7].mxu1 }
 0x10b   : > { %v862_v57 = vpop.f32.mrb[8].mxu1 }
 0x10c   : > { %v1512_v58 = vpop.f32.mrb[9].mxu1 }
 0x10d   : > { %v865_v59 = vpop.f32.mrb[10].mxu1 }
 0x10e   : > { %v1494_v48 = vpop.f32.mrb[0].mxu0  ;;  %v1513_v60 = vpop.f32.mrb[11].mxu1 }
 0x10f   : > { %688 = vst.msk [vmem:[#allocation2 + $0x10] sm:$0xff] %vm685_vm6, %v1494_v48  ;;  %v654_v1 = vpop.f32.mrb[1].mxu0 }
 0x110   : > { %686 = vst.msk [vmem:[#allocation2] sm:$0xff] %vm685_vm6, %v654_v1  ;;  %v1495_v61 = vpop.f32.mrb[2].mxu0 }
 0x111   : > { %689 = vst.msk [vmem:[#allocation2 + $0x18] sm:$0xff] %vm685_vm6, %v1495_v61  ;;  %v657_v3 = vpop.f32.mrb[3].mxu0 }
 0x112   : > { %687 = vst.msk [vmem:[#allocation2 + $0x8] sm:$0xff] %vm685_vm6, %v657_v3 }
 0x113   : > { %v933_v62 = vpop.f32.mrb[12].mxu1 }
 0x114   : > { %v934_v0 = vadd.f32 %v933_v62, %v846_v9  ;;  %v1518_v2 = vpop.f32.mrb[13].mxu1 }
 0x115   : > { %v936_v6 = vpop.f32.mrb[14].mxu1 }
 0x116   : > { %v1498_v7 = vpop.f32.mrb[4].mxu0  ;;  %v937_v8 = vadd.f32 %v936_v6, %v849_v51  ;;  %v1519_v10 = vpop.f32.mrb[15].mxu1  ;;  %v778_v24 = vld [vmem:[#allocation2 + $0x10] sm:$0xff] }
 0x117   : > { %v776_v12 = vld [vmem:[#allocation2] sm:$0xff]  ;;  %692 = vst.msk [vmem:[#allocation2 + $0x30] sm:$0xff] %vm685_vm6, %v1498_v7  ;;  %v670_v14 = vpop.f32.mrb[5].mxu0 }
 0x118   : > { %v956_v15 = vadd.f32 %v934_v0, %v776_v12  ;;  %690 = vst.msk [vmem:[#allocation2 + $0x20] sm:$0xff] %vm685_vm6, %v670_v14  ;;  %v1499_v16 = vpop.f32.mrb[6].mxu0  ;;  %v779_v34 = vld [vmem:[#allocation2 + $0x18] sm:$0xff] }
 0x119   : > { %v777_v17 = vld [vmem:[#allocation2 + $0x8] sm:$0xff]  ;;  %693 = vst.msk [vmem:[#allocation2 + $0x38] sm:$0xff] %vm685_vm6, %v1499_v16  ;;  %v673_v18 = vpop.f32.mrb[7].mxu0 }
 0x11a   : > { %962 = vst.msk [vmem:[#allocation2] sm:$0xff] %vm685_vm6, %v956_v15  ;;  %v957_v19 = vadd.f32 %v937_v8, %v777_v17  ;;  %691 = vst.msk [vmem:[#allocation2 + $0x28] sm:$0xff] %vm685_vm6, %v673_v18 }
 0x11b   : > { %v941_v21 = vpop.f32.mrb[16].mxu1 }
 0x11c   : > { %963 = vst.msk [vmem:[#allocation2 + $0x8] sm:$0xff] %vm685_vm6, %v957_v19  ;;  %v942_v22 = vadd.f32 %v941_v21, %v854_v53  ;;  %v1522_v23 = vpop.f32.mrb[17].mxu1 }
 0x11d   : > { %v944_v25 = vpop.f32.mrb[18].mxu1 }
 0x11e   : > { %v958_v27 = vadd.f32 %v942_v22, %v778_v24  ;;  %v1041_v28 = vpop.f32.mrb[8].mxu0  ;;  %v945_v31 = vadd.f32 %v944_v25, %v857_v55  ;;  %v1523_v32 = vpop.f32.mrb[19].mxu1  ;;  %v971_v63 = vld [vmem:[#allocation2 + $0x30] sm:$0xff] }
 0x11f   : > { %v1532_v35 = vpop.f32.mrb[9].mxu0  ;;  %v780_v30 = vld [vmem:[#allocation2 + $0x20] sm:$0xff] }
 0x120   : > { %964 = vst.msk [vmem:[#allocation2 + $0x10] sm:$0xff] %vm685_vm6, %v958_v27  ;;  %v959_v37 = vadd.f32 %v945_v31, %v779_v34  ;;  %v1044_v38 = vpop.f32.mrb[10].mxu0 }
 0x121   : > { %v1533_v39 = vpop.f32.mrb[11].mxu0  ;;  %v1101_v40 = vld [vmem:[#allocation2] sm:$0xff]  ;;  %v781_v47 = vld [vmem:[#allocation2 + $0x28] sm:$0xff] }
 0x122   : > { %965 = vst.msk [vmem:[#allocation2 + $0x18] sm:$0xff] %vm685_vm6, %v959_v37  ;;  %v1116_v41 = vadd.f32 %v1450_v36, %v1101_v40 }
 0x123   : > { %v949_v4 = vpop.f32.mrb[20].mxu1  ;;  %v1102_v5 = vld [vmem:[#allocation2 + $0x8] sm:$0xff] }
 0x124   : > { %v950_v42 = vadd.f32 %v949_v4, %v862_v57  ;;  %v1124_v43 = vsel %vm685_vm6, %v1116_v41, 0.0  ;;  %v1526_v20 = vpop.f32.mrb[21].mxu1  ;;  %v1117_v29 = vadd.f32 %v1450_v36, %v1102_v5  ;;  %v972_v57 = vld [vmem:[#allocation2 + $0x38] sm:$0xff] }
 0x125   : > { %1125 = vadd.xlane.f32.xlu0 %v1124_v43  ;;  %v952_v45 = vpop.f32.mrb[22].mxu1 }
 0x126   : > { %v960_v44 = vadd.f32 %v950_v42, %v780_v30  ;;  %v1090_v49 = vpop.f32.mrb[12].mxu0  ;;  %v953_v46 = vadd.f32 %v952_v45, %v865_v59  ;;  %v1527_v11 = vpop.f32.mrb[23].mxu1  ;;  %v1127_v51 = vsel %vm685_vm6, %v1117_v29, 0.0 }
 0x127   : > { %v1091_v13 = vadd.f32 %v1090_v49, %v1041_v28  ;;  %v1538_v26 = vpop.f32.mrb[13].mxu0  ;;  %v1103_v33 = vld [vmem:[#allocation2 + $0x10] sm:$0xff] }
 0x128   : > { %966 = vst.msk [vmem:[#allocation2 + $0x20] sm:$0xff] %vm685_vm6, %v960_v44  ;;  %v961_v9 = vadd.f32 %v953_v46, %v781_v47  ;;  %v1093_v50 = vpop.f32.mrb[14].mxu0  ;;  %v1118_v52 = vadd.f32 %v1450_v36, %v1103_v33 }
 0x129   : > { %v1097_v53 = vadd.f32 %v1091_v13, %v971_v63  ;;  %v1094_v54 = vadd.f32 %v1093_v50, %v1044_v38  ;;  %1128 = vadd.xlane.f32.xlu0 %v1127_v51  ;;  %v1539_v55 = vpop.f32.mrb[15].mxu0  ;;  %v1104_v56 = vld [vmem:[#allocation2 + $0x18] sm:$0xff] }
 0x12a   : > { %967 = vst.msk [vmem:[#allocation2 + $0x28] sm:$0xff] %vm685_vm6, %v961_v9  ;;  %v1130_v58 = vsel %vm685_vm6, %v1118_v52, 0.0  ;;  %v1119_v59 = vadd.f32 %v1450_v36, %v1104_v56 }
 0x12b   : > { %1099 = vst.msk [vmem:[#allocation2 + $0x30] sm:$0xff] %vm685_vm6, %v1097_v53  ;;  %v1098_v48 = vadd.f32 %v1094_v54, %v972_v57  ;;  %1131 = vadd.xlane.f32.xlu1 %v1130_v58 }
 0x12c   : > { %v1133_v60 = vsel %vm685_vm6, %v1119_v59, 0.0 }
 0x12d   : > { %1100 = vst.msk [vmem:[#allocation2 + $0x38] sm:$0xff] %vm685_vm6, %v1098_v48 }
 0x12f   : > { %1134 = vadd.xlane.f32.xlu1 %v1133_v60  ;;  %v1105_v1 = vld [vmem:[#allocation2 + $0x20] sm:$0xff] }
 0x130   : > { %v1120_v61 = vadd.f32 %v1450_v36, %v1105_v1 }
 0x131   : > { %v1106_v3 = vld [vmem:[#allocation2 + $0x28] sm:$0xff] }
 0x132   : > { %v1136_v62 = vsel %vm685_vm6, %v1120_v61, 0.0  ;;  %v1121_v0 = vadd.f32 %v1450_v36, %v1106_v3  ;;  %v1107_v2 = vld [vmem:[#allocation2 + $0x30] sm:$0xff]  ;;  %v1451_v3 = vld [vmem:[%s2005_s4] ss:$0 sm:$0xff] }
 0x133   : > { %1137 = vadd.xlane.f32.xlu0 %v1136_v62  ;;  %v1122_v6 = vadd.f32 %v1450_v36, %v1107_v2 }
 0x134   : > { %v1139_v7 = vsel %vm685_vm6, %v1121_v0, 0.0  ;;  %v1108_v8 = vld [vmem:[#allocation2 + $0x38] sm:$0xff] }
 0x135   : > { %1140 = vadd.xlane.f32.xlu1 %v1139_v7  ;;  %v1123_v10 = vadd.f32 %v1450_v36, %v1108_v8  ;;  %v1142_v12 = vsel %vm685_vm6, %v1122_v6, 0.0 }
 0x137   : > { %1143 = vadd.xlane.f32.xlu0 %v1142_v12  ;;  %v1145_v14 = vsel %vm685_vm6, %v1123_v10, 0.0 }
 0x139   : > { %1146 = vadd.xlane.f32.xlu1 %v1145_v14 }
 0x1b2   : > { %v1126_v15 = vpop.xlane.xlu0 %1125 }
 0x1b3   : > { %v1149_v16 = vmul.f32 0.125, %v1126_v15 }
 0x1b5   : > { %v1916_v17 = vsub.f32 %v1116_v41, %v1149_v16 }
 0x1b6   : > { %v1129_v18 = vpop.xlane.xlu0 %1128 }
 0x1b7   : > { %v1150_v19 = vmul.f32 0.125, %v1129_v18  ;;  %v1165_v21 = vmul.f32 %v1916_v17, %v1916_v17 }
 0x1b8   : > { %v1132_v22 = vpop.xlane.xlu1 %1131 }
 0x1b9   : > { %v1920_v23 = vsub.f32 %v1117_v29, %v1150_v19  ;;  %v1151_v24 = vmul.f32 0.125, %v1132_v22  ;;  %v1173_v25 = vsel %vm685_vm6, %v1165_v21, 0.0 }
 0x1ba   : > { %1174 = vadd.xlane.f32.xlu0 %v1173_v25 }
 0x1bb   : > { %v1923_v27 = vsub.f32 %v1118_v52, %v1151_v24  ;;  %v1166_v28 = vmul.f32 %v1920_v23, %v1920_v23 }
 0x1bc   : > { %v1135_v31 = vpop.xlane.xlu1 %1134 }
 0x1bd   : > { %v1152_v32 = vmul.f32 0.125, %v1135_v31  ;;  %v1176_v34 = vsel %vm685_vm6, %v1166_v28, 0.0  ;;  %v1167_v35 = vmul.f32 %v1923_v27, %v1923_v27 }
 0x1be   : > { %1177 = vadd.xlane.f32.xlu1 %v1176_v34 }
 0x1bf   : > { %v1930_v36 = vsub.f32 %v1119_v59, %v1152_v32  ;;  %v1179_v37 = vsel %vm685_vm6, %v1167_v35, 0.0 }
 0x1c0   : > { %v1138_v38 = vpop.xlane.xlu0 %1137  ;;  %1180 = vadd.xlane.f32.xlu0 %v1179_v37 }
 0x1c1   : > { %v1153_v39 = vmul.f32 0.125, %v1138_v38  ;;  %v1168_v40 = vmul.f32 %v1930_v36, %v1930_v36 }
 0x1c2   : > { %v1141_v41 = vpop.xlane.xlu1 %1140 }
 0x1c3   : > { %v1935_v4 = vsub.f32 %v1120_v61, %v1153_v39  ;;  %v1154_v5 = vmul.f32 0.125, %v1141_v41  ;;  %v1182_v42 = vsel %vm685_vm6, %v1168_v40, 0.0 }
 0x1c4   : > { %v1144_v43 = vpop.xlane.xlu0 %1143  ;;  %1183 = vadd.xlane.f32.xlu1 %v1182_v42 }
 0x1c5   : > { %v1938_v20 = vsub.f32 %v1121_v0, %v1154_v5  ;;  %v1155_v29 = vmul.f32 0.125, %v1144_v43  ;;  %v1169_v30 = vmul.f32 %v1935_v4, %v1935_v4 }
 0x1c6   : > { %v1147_v45 = vpop.xlane.xlu1 %1146 }
 0x1c7   : > { %v1942_v44 = vsub.f32 %v1122_v6, %v1155_v29  ;;  %v1156_v49 = vmul.f32 0.125, %v1147_v45  ;;  %v1185_v46 = vsel %vm685_vm6, %v1169_v30, 0.0  ;;  %v1170_v11 = vmul.f32 %v1938_v20, %v1938_v20  ;;  %v1452_v6 = vld [vmem:[%s2006_s5] ss:$0 sm:$0xff] }
 0x1c8   : > { %1186 = vadd.xlane.f32.xlu0 %v1185_v46 }
 0x1c9   : > { %v1947_v13 = vsub.f32 %v1123_v10, %v1156_v49  ;;  %v1188_v47 = vsel %vm685_vm6, %v1170_v11, 0.0  ;;  %v1171_v26 = vmul.f32 %v1942_v44, %v1942_v44 }
 0x1ca   : > { %1189 = vadd.xlane.f32.xlu1 %v1188_v47 }
 0x1cb   : > { %v1191_v33 = vsel %vm685_vm6, %v1171_v26, 0.0  ;;  %v1172_v63 = vmul.f32 %v1947_v13, %v1947_v13 }
 0x1cc   : > { %1192 = vadd.xlane.f32.xlu0 %v1191_v33 }
 0x1cd   : > { %v1194_v9 = vsel %vm685_vm6, %v1172_v63, 0.0 }
 0x1ce   : > { %1195 = vadd.xlane.f32.xlu1 %v1194_v9 }
 0x247   : > { %v1175_v50 = vpop.xlane.xlu0 %1174 }
 0x248   : > { %v1197_v51 = vmul.f32 0.125, %v1175_v50 }
 0x24a   : > { %v1205_v52 = vadd.f32 1e-05, %v1197_v51 }
 0x24b   : > { %v1178_v53 = vpop.xlane.xlu1 %1177 }
 0x24c   : > { %1592 = vrsqrt.f32 %v1205_v52  ;;  %v1198_v54 = vmul.f32 0.125, %v1178_v53 }
 0x24d   : > { %v1181_v55 = vpop.xlane.xlu0 %1180 }
 0x24e   : > { %v1206_v56 = vadd.f32 1e-05, %v1198_v54  ;;  %v1199_v57 = vmul.f32 0.125, %v1181_v55 }
 0x250   : > { %1594 = vrsqrt.f32 %v1206_v56  ;;  %v1207_v58 = vadd.f32 1e-05, %v1199_v57 }
 0x251   : > { %v1184_v59 = vpop.xlane.xlu1 %1183 }
 0x252   : > { %1596 = vrsqrt.f32 %v1207_v58  ;;  %v1200_v48 = vmul.f32 0.125, %v1184_v59 }
 0x254   : > { %v1208_v60 = vadd.f32 1e-05, %v1200_v48 }
 0x255   : > { %v1187_v1 = vpop.xlane.xlu0 %1186 }
 0x256   : > { %v1593_v61 = vpop.eup %1592  ;;  %1598 = vrsqrt.f32 %v1208_v60  ;;  %v1201_v62 = vmul.f32 0.125, %v1187_v1 }
 0x257   : > { %v1221_v0 = vmul.f32 %v1593_v61, %v1916_v17  ;;  %v1190_v2 = vpop.xlane.xlu1 %1189 }
 0x258   : > { %v1209_v7 = vadd.f32 1e-05, %v1201_v62  ;;  %v1202_v8 = vmul.f32 0.125, %v1190_v2 }
 0x259   : > { %v1236_v10 = vmul.f32 %v1451_v3, %v1221_v0  ;;  %v1193_v12 = vpop.xlane.xlu0 %1192 }
 0x25a   : > { %v1595_v14 = vpop.eup %1594  ;;  %1600 = vrsqrt.f32 %v1209_v7  ;;  %v1210_v15 = vadd.f32 1e-05, %v1202_v8  ;;  %v1203_v16 = vmul.f32 0.125, %v1193_v12 }
 0x25b   : > { %v1251_v17 = vadd.f32 %v1452_v6, %v1236_v10  ;;  %v1222_v18 = vmul.f32 %v1595_v14, %v1920_v23  ;;  %v1196_v19 = vpop.xlane.xlu1 %1195 }
 0x25c   : > { %v1597_v21 = vpop.eup %1596  ;;  %1602 = vrsqrt.f32 %v1210_v15  ;;  %v1211_v22 = vadd.f32 1e-05, %v1203_v16  ;;  %v1204_v24 = vmul.f32 0.125, %v1196_v19 }
 0x25d   : > { %1259 = vst.msk [vmem:[%s1967_s10] sm:$0xff] %vm685_vm6, %v1251_v17  ;;  %v1237_v25 = vmul.f32 %v1451_v3, %v1222_v18  ;;  %v1223_v28 = vmul.f32 %v1597_v21, %v1923_v27 }
 0x25e   : > { %1604 = vrsqrt.f32 %v1211_v22  ;;  %v1212_v31 = vadd.f32 1e-05, %v1204_v24 }
 0x25f   : > { %v1252_v32 = vadd.f32 %v1452_v6, %v1237_v25  ;;  %v1238_v34 = vmul.f32 %v1451_v3, %v1223_v28 }
 0x260   : > { %v1599_v35 = vpop.eup %1598  ;;  %1606 = vrsqrt.f32 %v1212_v31 }
 0x261   : > { %1260 = vst.msk [vmem:[%s1967_s10 + $0x8] sm:$0xff] %vm685_vm6, %v1252_v32  ;;  %v1253_v23 = vadd.f32 %v1452_v6, %v1238_v34  ;;  %v1224_v37 = vmul.f32 %v1599_v35, %v1930_v36 }
 0x263   : > { %1261 = vst.msk [vmem:[%s1967_s10 + $0x10] sm:$0xff] %vm685_vm6, %v1253_v23  ;;  %v1239_v38 = vmul.f32 %v1451_v3, %v1224_v37 }
 0x264   : > { %v1601_v39 = vpop.eup %1600 }
 0x265   : > { %v1254_v40 = vadd.f32 %v1452_v6, %v1239_v38  ;;  %v1225_v27 = vmul.f32 %v1601_v39, %v1935_v4 }
 0x266   : > { %v1603_v41 = vpop.eup %1602 }
 0x267   : > { %1262 = vst.msk [vmem:[%s1967_s10 + $0x18] sm:$0xff] %vm685_vm6, %v1254_v40  ;;  %v1240_v5 = vmul.f32 %v1451_v3, %v1225_v27  ;;  %v1226_v42 = vmul.f32 %v1603_v41, %v1938_v20 }
 0x268   : > { %v1605_v43 = vpop.eup %1604 }
 0x269   : > { %v1255_v29 = vadd.f32 %v1452_v6, %v1240_v5  ;;  %v1241_v30 = vmul.f32 %v1451_v3, %v1226_v42  ;;  %v1227_v36 = vmul.f32 %v1605_v43, %v1942_v44 }
 0x26a   : > { %v1607_v45 = vpop.eup %1606 }
 0x26b   : > { %1263 = vst.msk [vmem:[%s1967_s10 + $0x20] sm:$0xff] %vm685_vm6, %v1255_v29  ;;  %v1256_v49 = vadd.f32 %v1452_v6, %v1241_v30  ;;  %v1242_v46 = vmul.f32 %v1451_v3, %v1227_v36  ;;  %v1228_v4 = vmul.f32 %v1607_v45, %v1947_v13 }
 0x26d   : > { %1264 = vst.msk [vmem:[%s1967_s10 + $0x28] sm:$0xff] %vm685_vm6, %v1256_v49  ;;  %v1257_v11 = vadd.f32 %v1452_v6, %v1242_v46  ;;  %v1243_v47 = vmul.f32 %v1451_v3, %v1228_v4 }
 0x26f   : > { %1265 = vst.msk [vmem:[%s1967_s10 + $0x30] sm:$0xff] %vm685_vm6, %v1257_v11  ;;  %v1258_v26 = vadd.f32 %v1452_v6, %v1243_v47 }
 0x271   : > { %1266 = vst.msk [vmem:[%s1967_s10 + $0x38] sm:$0xff] %vm685_vm6, %v1258_v26 }
 0x272 PF: > { %s16_s23 = sadd.s32 1, %s1630_s23   ;;  %s2010_s21 = smov %s1626_s22 }
 0x273   : > { %p13_p5 = scmp.ge.s32.totalorder %s16_s23, 4   ;;  %s2011_s22 = smov %s2013_s24 }
 0x275   :  { %15 = sbr.rel (!%p13_p5) target bundleno = 2 (0x2), region = 81 }

</bundles_post_ra>
